<compile_context>
chip_gen: v5e
topology: v5e:2x2
jax: 0.10.0
libtpu: 0.0.40
codegen_flags: <defaults>
</compile_context>

<pallas_src>
import functools

import jax
import jax.numpy as jnp
from jax.experimental import pallas as pl
from jax.experimental.pallas import tpu as pltpu

LANE = 128
SUBLANE = 8
HIDDEN = 256
NEG_BIG = -1e30  # bias for padded class lanes: exp() underflows to exactly 0


def _round_up(x, m):
    return (x + m - 1) // m * m


def classifier_kernel(x_ref, w1_ref, b1_ref, w2_ref, b2_ref,
                      w3_ref, b3_ref, w4_ref, b4_ref, out_ref):
    # fc1 + relu (bf16 operands, f32 MXU accumulation)
    h = jnp.dot(x_ref[...], w1_ref[...], preferred_element_type=jnp.float32)
    h = jnp.maximum(h + b1_ref[...], 0.0).astype(jnp.bfloat16)
    # fc2 + relu
    h = jnp.dot(h, w2_ref[...], preferred_element_type=jnp.float32)
    h = jnp.maximum(h + b2_ref[...], 0.0).astype(jnp.bfloat16)
    # fc3 + relu
    h = jnp.dot(h, w3_ref[...], preferred_element_type=jnp.float32)
    h = jnp.maximum(h + b3_ref[...], 0.0).astype(jnp.bfloat16)
    # fc4: logits over 128 padded class lanes (padded lanes carry -1e30 bias)
    logits = jnp.dot(h, w4_ref[...], preferred_element_type=jnp.float32)
    logits = logits + b4_ref[...]
    # numerically stable log_softmax over the class axis; padded lanes give
    # exp() == 0 so the real classes are unaffected.
    m = jnp.max(logits, axis=-1, keepdims=True)
    shifted = logits - m
    lse = jnp.log(jnp.sum(jnp.exp(shifted), axis=-1, keepdims=True))
    out_ref[...] = shifted - lse


def prepare_params(params, *, slen=28, n_classes=10):
    """One-time conversion of PyTorch-layout params ((out,in) weights, (out,)
    biases) into kernel-ready form: (in,out) bf16 weights, (1,out) f32 biases,
    fc1 K-dim zero-padded to a multiple of 128, class dim padded to 128 with
    -1e30 biases. Do NOT call this per forward pass."""
    w1, b1, w2, b2, w3, b3, w4, b4 = params
    n_pixels = slen * slen
    k_pad = _round_up(n_pixels, LANE)
    n_pad = _round_up(n_classes, LANE)

    w1p = jnp.zeros((k_pad, HIDDEN), jnp.float32).at[:n_pixels, :].set(w1.T)
    w4p = jnp.zeros((HIDDEN, n_pad), jnp.float32).at[:, :n_classes].set(w4.T)
    b4p = jnp.full((1, n_pad), NEG_BIG, jnp.float32).at[0, :n_classes].set(b4)

    return (
        w1p.astype(jnp.bfloat16), b1.reshape(1, -1).astype(jnp.float32),
        w2.T.astype(jnp.bfloat16), b2.reshape(1, -1).astype(jnp.float32),
        w3.T.astype(jnp.bfloat16), b3.reshape(1, -1).astype(jnp.float32),
        w4p.astype(jnp.bfloat16), b4p,
    )


@functools.partial(jax.jit, static_argnames=("slen", "n_classes"))
def classifier_forward(image, kernel_params, *, slen=28, n_classes=10):
    """image: any shape that flattens to (B, slen*slen); kernel_params from
    prepare_params. Returns (B, n_classes) log-probabilities."""
    n_pixels = slen * slen
    k_pad = _round_up(n_pixels, LANE)
    n_pad = _round_up(n_classes, LANE)

    x = image.reshape(-1, n_pixels)
    b = x.shape[0]

    # Batch tile: multiple of 8 sublanes, large enough to amortize the
    # ~0.35us/step overhead, small enough (~1.75 MiB bf16 at 1024x896) to sit
    # comfortably inside every generation's default scoped-VMEM limit.
    tile_b = min(1024, _round_up(b, SUBLANE))
    b_pad = _round_up(b, tile_b)

    # cast to bf16 and zero-pad batch rows + pixel columns in one shot
    x = jnp.pad(x.astype(jnp.bfloat16),
                ((0, b_pad - b), (0, k_pad - n_pixels)))

    w1, b1, w2, b2, w3, b3, w4, b4 = kernel_params

    def resident(shape):  # weights/biases: same block every grid step -> DMA'd once
        return pl.BlockSpec(shape, lambda i: (0, 0))

    out = pl.pallas_call(
        classifier_kernel,
        out_shape=jax.ShapeDtypeStruct((b_pad, n_pad), jnp.float32),
        grid=(b_pad // tile_b,),
        in_specs=[
            pl.BlockSpec((tile_b, k_pad), lambda i: (i, 0)),
            resident(w1.shape), resident(b1.shape),
            resident(w2.shape), resident(b2.shape),
            resident(w3.shape), resident(b3.shape),
            resident(w4.shape), resident(b4.shape),
        ],
        out_specs=pl.BlockSpec((tile_b, n_pad), lambda i: (i, 0)),
        compiler_params=pltpu.CompilerParams(
            dimension_semantics=("parallel",)),
    )(x, w1, b1, w2, b2, w3, b3, w4, b4)

    return out[:b, :n_classes]


def init_params(key, slen=28, n_classes=10):
    """Deterministic synthetic params matching nn.Linear shapes (out, in)."""
    n_pixels = slen * slen
    dims = [(256, n_pixels), (256, 256), (256, 256), (n_classes, 256)]
    params = []
    for i, (dout, din) in enumerate(dims):
        kw, kb = jax.random.split(jax.random.fold_in(key, i))
        bound = 1.0 / jnp.sqrt(din)  # PyTorch default Linear init range
        w = jax.random.uniform(kw, (dout, din), jnp.float32, -bound, bound)
        b = jax.random.uniform(kb, (dout,), jnp.float32, -bound, bound)
        params += [w, b]
    return tuple(params)


def reference_forward(image, params, slen=28):
    """Pure-JAX f32 reference matching the PyTorch module."""
    w1, b1, w2, b2, w3, b3, w4, b4 = params
    h = image.reshape(-1, slen * slen).astype(jnp.float32)
    h = jax.nn.relu(h @ w1.T + b1)
    h = jax.nn.relu(h @ w2.T + b2)
    h = jax.nn.relu(h @ w3.T + b3)
    logits = h @ w4.T + b4
    return jax.nn.log_softmax(logits, axis=1)


if __name__ == "__main__":
    key = jax.random.PRNGKey(0)
    k_img, k_par = jax.random.split(key)

    slen, n_classes, batch = 28, 10, 2
    # NCHW-style image input, matching the module's expected MNIST layout.
    image = jax.random.uniform(k_img, (batch, 1, slen, slen), jnp.float32)
    params = init_params(k_par, slen=slen, n_classes=n_classes)

    kparams = prepare_params(params, slen=slen, n_classes=n_classes)  # once
    out = classifier_forward(image, kparams, slen=slen, n_classes=n_classes)
    out = jax.block_until_ready(out)

    ref = reference_forward(image, params, slen=slen)
    assert out.shape == (batch, n_classes)
    # bf16 MXU operands with f32 accumulation -> loosened tolerance vs f32 ref
    assert jnp.allclose(out, ref, atol=5e-2, rtol=5e-2), (
        f"max abs err {jnp.max(jnp.abs(out - ref))}")
    assert jnp.array_equal(jnp.argmax(out, axis=1), jnp.argmax(ref, axis=1))

    print("KERNEL_OK")
</pallas_src>

<mosaic_0001>
module attributes {stable_mosaic.version = 11 : i64} {
  func.func @classifier_kernel(%arg0: i32, %arg1: memref<8x896xbf16, #tpu.memory_space<vmem>>, %arg2: memref<896x256xbf16, #tpu.memory_space<vmem>>, %arg3: memref<1x256xf32, #tpu.memory_space<vmem>>, %arg4: memref<256x256xbf16, #tpu.memory_space<vmem>>, %arg5: memref<1x256xf32, #tpu.memory_space<vmem>>, %arg6: memref<256x256xbf16, #tpu.memory_space<vmem>>, %arg7: memref<1x256xf32, #tpu.memory_space<vmem>>, %arg8: memref<256x128xbf16, #tpu.memory_space<vmem>>, %arg9: memref<1x128xf32, #tpu.memory_space<vmem>>, %arg10: memref<8x128xf32, #tpu.memory_space<vmem>>) attributes {dimension_semantics = [#tpu.dimension_semantics<parallel>], iteration_bounds = array<i64: 1>, scalar_prefetch = 0 : i64, scratch_operands = 0 : i64, tpu.core_type = #tpu.core_type<tc>, window_params = [{transform_indices = @transform_0, window_bounds = array<i64: 8, 896>}, {pipeline_mode = #tpu.pipeline_mode<synchronous>, transform_indices = @transform_1, window_bounds = array<i64: 896, 256>}, {pipeline_mode = #tpu.pipeline_mode<synchronous>, transform_indices = @transform_2, window_bounds = array<i64: 1, 256>}, {pipeline_mode = #tpu.pipeline_mode<synchronous>, transform_indices = @transform_3, window_bounds = array<i64: 256, 256>}, {pipeline_mode = #tpu.pipeline_mode<synchronous>, transform_indices = @transform_4, window_bounds = array<i64: 1, 256>}, {pipeline_mode = #tpu.pipeline_mode<synchronous>, transform_indices = @transform_5, window_bounds = array<i64: 256, 256>}, {pipeline_mode = #tpu.pipeline_mode<synchronous>, transform_indices = @transform_6, window_bounds = array<i64: 1, 256>}, {pipeline_mode = #tpu.pipeline_mode<synchronous>, transform_indices = @transform_7, window_bounds = array<i64: 256, 128>}, {pipeline_mode = #tpu.pipeline_mode<synchronous>, transform_indices = @transform_8, window_bounds = array<i64: 1, 128>}, {transform_indices = @transform_9, window_bounds = array<i64: 8, 128>}]} {
    %c0 = arith.constant 0 : index
    %c0_0 = arith.constant 0 : index
    %0 = vector.load %arg1[%c0, %c0_0] : memref<8x896xbf16, #tpu.memory_space<vmem>>, vector<8x896xbf16>
    %c0_1 = arith.constant 0 : index
    %c0_2 = arith.constant 0 : index
    %1 = vector.load %arg2[%c0_1, %c0_2] : memref<896x256xbf16, #tpu.memory_space<vmem>>, vector<896x256xbf16>
    %cst = arith.constant dense<0.000000e+00> : vector<8x256xf32>
    %2 = tpu.matmul %0, %1, %cst {dimension_numbers = #tpu.dot_dimension_numbers<[1], [0], [0], [1], [0, 0, 1, 1], [], []>} : vector<8x896xbf16>, vector<896x256xbf16>, vector<8x256xf32> -> vector<8x256xf32>
    %c0_3 = arith.constant 0 : index
    %c0_4 = arith.constant 0 : index
    %3 = vector.load %arg3[%c0_3, %c0_4] : memref<1x256xf32, #tpu.memory_space<vmem>>, vector<1x256xf32>
    %4 = vector.broadcast %3 : vector<1x256xf32> to vector<8x256xf32>
    %5 = arith.addf %2, %4 : vector<8x256xf32>
    %cst_5 = arith.constant 0.000000e+00 : f32
    %6 = vector.broadcast %cst_5 : f32 to vector<8x256xf32>
    %7 = arith.maximumf %5, %6 : vector<8x256xf32>
    %8 = arith.truncf %7 : vector<8x256xf32> to vector<8x256xbf16>
    %c0_6 = arith.constant 0 : index
    %c0_7 = arith.constant 0 : index
    %9 = vector.load %arg4[%c0_6, %c0_7] : memref<256x256xbf16, #tpu.memory_space<vmem>>, vector<256x256xbf16>
    %cst_8 = arith.constant dense<0.000000e+00> : vector<8x256xf32>
    %10 = tpu.matmul %8, %9, %cst_8 {dimension_numbers = #tpu.dot_dimension_numbers<[1], [0], [0], [1], [0, 0, 1, 1], [], []>} : vector<8x256xbf16>, vector<256x256xbf16>, vector<8x256xf32> -> vector<8x256xf32>
    %c0_9 = arith.constant 0 : index
    %c0_10 = arith.constant 0 : index
    %11 = vector.load %arg5[%c0_9, %c0_10] : memref<1x256xf32, #tpu.memory_space<vmem>>, vector<1x256xf32>
    %12 = vector.broadcast %11 : vector<1x256xf32> to vector<8x256xf32>
    %13 = arith.addf %10, %12 : vector<8x256xf32>
    %cst_11 = arith.constant 0.000000e+00 : f32
    %14 = vector.broadcast %cst_11 : f32 to vector<8x256xf32>
    %15 = arith.maximumf %13, %14 : vector<8x256xf32>
    %16 = arith.truncf %15 : vector<8x256xf32> to vector<8x256xbf16>
    %c0_12 = arith.constant 0 : index
    %c0_13 = arith.constant 0 : index
    %17 = vector.load %arg6[%c0_12, %c0_13] : memref<256x256xbf16, #tpu.memory_space<vmem>>, vector<256x256xbf16>
    %cst_14 = arith.constant dense<0.000000e+00> : vector<8x256xf32>
    %18 = tpu.matmul %16, %17, %cst_14 {dimension_numbers = #tpu.dot_dimension_numbers<[1], [0], [0], [1], [0, 0, 1, 1], [], []>} : vector<8x256xbf16>, vector<256x256xbf16>, vector<8x256xf32> -> vector<8x256xf32>
    %c0_15 = arith.constant 0 : index
    %c0_16 = arith.constant 0 : index
    %19 = vector.load %arg7[%c0_15, %c0_16] : memref<1x256xf32, #tpu.memory_space<vmem>>, vector<1x256xf32>
    %20 = vector.broadcast %19 : vector<1x256xf32> to vector<8x256xf32>
    %21 = arith.addf %18, %20 : vector<8x256xf32>
    %cst_17 = arith.constant 0.000000e+00 : f32
    %22 = vector.broadcast %cst_17 : f32 to vector<8x256xf32>
    %23 = arith.maximumf %21, %22 : vector<8x256xf32>
    %24 = arith.truncf %23 : vector<8x256xf32> to vector<8x256xbf16>
    %c0_18 = arith.constant 0 : index
    %c0_19 = arith.constant 0 : index
    %25 = vector.load %arg8[%c0_18, %c0_19] : memref<256x128xbf16, #tpu.memory_space<vmem>>, vector<256x128xbf16>
    %cst_20 = arith.constant dense<0.000000e+00> : vector<8x128xf32>
    %26 = tpu.matmul %24, %25, %cst_20 {dimension_numbers = #tpu.dot_dimension_numbers<[1], [0], [0], [1], [0, 0, 1, 1], [], []>} : vector<8x256xbf16>, vector<256x128xbf16>, vector<8x128xf32> -> vector<8x128xf32>
    %c0_21 = arith.constant 0 : index
    %c0_22 = arith.constant 0 : index
    %27 = vector.load %arg9[%c0_21, %c0_22] : memref<1x128xf32, #tpu.memory_space<vmem>>, vector<1x128xf32>
    %28 = vector.broadcast %27 : vector<1x128xf32> to vector<8x128xf32>
    %29 = arith.addf %26, %28 : vector<8x128xf32>
    %cst_23 = arith.constant dense<0xFF800000> : vector<8xf32>
    %30 = vector.multi_reduction <maximumf>, %29, %cst_23 [1] : vector<8x128xf32> to vector<8xf32>
    %31 = vector.shape_cast %30 : vector<8xf32> to vector<8x1xf32>
    %32 = vector.broadcast %31 : vector<8x1xf32> to vector<8x128xf32>
    %33 = arith.subf %29, %32 : vector<8x128xf32>
    %34 = math.exp %33 : vector<8x128xf32>
    %cst_24 = arith.constant dense<0.000000e+00> : vector<8xf32>
    %35 = vector.multi_reduction <add>, %34, %cst_24 [1] : vector<8x128xf32> to vector<8xf32>
    %36 = vector.shape_cast %35 : vector<8xf32> to vector<8x1xf32>
    %37 = math.log %36 : vector<8x1xf32>
    %38 = vector.broadcast %37 : vector<8x1xf32> to vector<8x128xf32>
    %39 = arith.subf %33, %38 : vector<8x128xf32>
    %c0_25 = arith.constant 0 : index
    %c0_26 = arith.constant 0 : index
    %40 = vector.load %arg10[%c0_25, %c0_26] : memref<8x128xf32, #tpu.memory_space<vmem>>, vector<8x128xf32>
    tpu.vector_store %arg10[%c0_25, %c0_26], %39 {strides = array<i32>} : memref<8x128xf32, #tpu.memory_space<vmem>>, vector<8x128xf32>,
    return
  }
  func.func @transform_0(%arg0: i32) -> (i32, i32) {
    %c0_i32 = arith.constant 0 : i32
    %c0_i32_0 = arith.constant 0 : i32
    return %arg0, %c0_i32 : i32, i32
  }
  func.func @transform_1(%arg0: i32) -> (i32, i32) {
    %c0_i32 = arith.constant 0 : i32
    %c0_i32_0 = arith.constant 0 : i32
    %c0_i32_1 = arith.constant 0 : i32
    return %c0_i32, %c0_i32_0 : i32, i32
  }
  func.func @transform_2(%arg0: i32) -> (i32, i32) {
    %c0_i32 = arith.constant 0 : i32
    %c0_i32_0 = arith.constant 0 : i32
    %c0_i32_1 = arith.constant 0 : i32
    return %c0_i32, %c0_i32_0 : i32, i32
  }
  func.func @transform_3(%arg0: i32) -> (i32, i32) {
    %c0_i32 = arith.constant 0 : i32
    %c0_i32_0 = arith.constant 0 : i32
    %c0_i32_1 = arith.constant 0 : i32
    return %c0_i32, %c0_i32_0 : i32, i32
  }
  func.func @transform_4(%arg0: i32) -> (i32, i32) {
    %c0_i32 = arith.constant 0 : i32
    %c0_i32_0 = arith.constant 0 : i32
    %c0_i32_1 = arith.constant 0 : i32
    return %c0_i32, %c0_i32_0 : i32, i32
  }
  func.func @transform_5(%arg0: i32) -> (i32, i32) {
    %c0_i32 = arith.constant 0 : i32
    %c0_i32_0 = arith.constant 0 : i32
    %c0_i32_1 = arith.constant 0 : i32
    return %c0_i32, %c0_i32_0 : i32, i32
  }
  func.func @transform_6(%arg0: i32) -> (i32, i32) {
    %c0_i32 = arith.constant 0 : i32
    %c0_i32_0 = arith.constant 0 : i32
    %c0_i32_1 = arith.constant 0 : i32
    return %c0_i32, %c0_i32_0 : i32, i32
  }
  func.func @transform_7(%arg0: i32) -> (i32, i32) {
    %c0_i32 = arith.constant 0 : i32
    %c0_i32_0 = arith.constant 0 : i32
    %c0_i32_1 = arith.constant 0 : i32
    return %c0_i32, %c0_i32_0 : i32, i32
  }
  func.func @transform_8(%arg0: i32) -> (i32, i32) {
    %c0_i32 = arith.constant 0 : i32
    %c0_i32_0 = arith.constant 0 : i32
    %c0_i32_1 = arith.constant 0 : i32
    return %c0_i32, %c0_i32_0 : i32, i32
  }
  func.func @transform_9(%arg0: i32) -> (i32, i32) {
    %c0_i32 = arith.constant 0 : i32
    %c0_i32_0 = arith.constant 0 : i32
    return %arg0, %c0_i32 : i32, i32
  }
}

</mosaic_0001>

<bundles_post_ra>
// kernel: classifier_forward.1
= control target key start
LH: loop header
LB: loop body
LE: loop exit
PB: predicated region body
PF: predicated region fallthrough
CT: control target
= control target key end

     0   :  { %14 = vsyncpa [#allocation3], 0  ;;  %s2878_s0 = inlined_call_operand.vmem [shape: bf16[8,896], index: 0, kind: input, shape index: {}]   ;;  %s2879_s1 = inlined_call_operand.hbm [shape: bf16[896,256], index: 1, kind: input, shape index: {}]   ;;  %s2880_s2 = inlined_call_operand.vmem [shape: f32[1,256], index: 2, kind: input, shape index: {}]   ;;  %s2881_s3 = inlined_call_operand.hbm [shape: bf16[256,256], index: 3, kind: input, shape index: {}]   ;;  %s2882_s4 = inlined_call_operand.vmem [shape: f32[1,256], index: 4, kind: input, shape index: {}]   ;;  %s2883_s5 = inlined_call_operand.hbm [shape: bf16[256,256], index: 5, kind: input, shape index: {}]   ;;  %s2884_s6 = inlined_call_operand.vmem [shape: f32[1,256], index: 6, kind: input, shape index: {}]   ;;  %s2885_s7 = inlined_call_operand.vmem [shape: bf16[256,128], index: 7, kind: input, shape index: {}]   ;;  %s2886_s8 = inlined_call_operand.vmem [shape: f32[1,128], index: 8, kind: input, shape index: {}]   ;;  %s2887_s9 = inlined_call_operand.vmem [shape: f32[8,128], index: 9, kind: output, shape index: {}]  }
   0x1   :  { %15 = vsyncpa [#allocation5], 0  ;;  %s37_s11 = sshll.u32 %s2881_s3, 4  ;;  %s2701_s12 = smov [#allocation4]   ;;  %s38_s11 = int_to_ptr.hbm [resolvable:$true] %s37_s11 }
   0x2   :  { %s39_s13 = sshll.u32 %s2701_s12, 4  ;;  %s22_s16 = sshll.u32 %s2879_s1, 4  ;;  %s40_s13 = int_to_ptr.vmem [resolvable:$true] %s39_s13  ;;  %s23_s16 = int_to_ptr.hbm [resolvable:$true] %s22_s16 }
   0x3   :  { %s2702_s17 = smov 128   ;;  %s2703_s18 = smov 8  }
   0x4   :  { %45 = dma.hbm_to_vmem [thread:$0]  %s38_s11, 4096, %s40_s13, [#allocation5], %s2702_s17, %s2702_s17, %s2703_s18  }
   0x5   :  { %s2704_s19 = smov [#allocation2]   ;;  %s52_s23 = sshll.u32 %s2883_s5, 4  ;;  %s53_s23 = int_to_ptr.hbm [resolvable:$true] %s52_s23 }
   0x6   :  { %s24_s20 = sshll.u32 %s2704_s19, 4  ;;  %s2705_s3 = smov [#allocation6]   ;;  %s25_s20 = int_to_ptr.vmem [resolvable:$true] %s24_s20 }
   0x7   :  { %30 = dma.hbm_to_vmem [thread:$0]  %s23_s16, 14336, %s25_s20, [#allocation3], %s2702_s17, %s2702_s17, %s2703_s18  }
   0x8   :  { %s54_s24 = sshll.u32 %s2705_s3, 4  ;;  %s55_s24 = int_to_ptr.vmem [resolvable:$true] %s54_s24 }
   0x9   :  { %60 = dma.hbm_to_vmem [thread:$0]  %s53_s23, 4096, %s55_s24, [#allocation5], %s2702_s17, %s2702_s17, %s2703_s18  }
   0xa   :  { %2697 = dma.done.wait [#allocation3], 14336  }
   0xb   :  { %2698 = vsyncadd [#allocation3], 4294952960 }
   0xc   :  { %2699 = dma.done.wait [#allocation5], 8192  }
   0xd   :  { %2700 = vsyncadd [#allocation5], 4294959104  ;;  %v1713_v0 = vld [vmem:[#allocation2 + $0x70] sm:$0xf]  ;;  %v2438_v1 = vld [vmem:[#allocation2 + $0x74] sm:$0xf0] }
   0xe   :  { %v1777_v2 = vld [vmem:[#allocation2 + $0xf0] sm:$0xf]  ;;  %v1714_v3 = vor.u32 %v2438_v1, %v1713_v0  ;;  %v2454_v4 = vld [vmem:[#allocation2 + $0xf4] sm:$0xf0]  ;;  %v1705_v9 = vld [vmem:[#allocation2 + $0x60] sm:$0xf] }
   0xf   :  { %v1841_v5 = vld [vmem:[#allocation2 + $0x170] sm:$0xf]  ;;  %v2470_v6 = vld [vmem:[#allocation2 + $0x174] sm:$0xf0]  ;;  %v1778_v7 = vor.u32 %v2454_v4, %v1777_v2  ;;  %v2436_v10 = vld [vmem:[#allocation2 + $0x64] sm:$0xf0] }
  0x10   :  { %v1842_v8 = vor.u32 %v2470_v6, %v1841_v5  ;;  %v1769_v11 = vld [vmem:[#allocation2 + $0xe0] sm:$0xf]  ;;  %786 = vmatpush.bf16.msra.mxu0 %v1714_v3  ;;  %v1706_v12 = vor.u32 %v2436_v10, %v1705_v9  ;;  %v2452_v13 = vld [vmem:[#allocation2 + $0xe4] sm:$0xf0]  ;;  %v1697_v18 = vld [vmem:[#allocation2 + $0x50] sm:$0xf] }
  0x11   :  { %v1833_v14 = vld [vmem:[#allocation2 + $0x160] sm:$0xf]  ;;  %v2468_v15 = vld [vmem:[#allocation2 + $0x164] sm:$0xf0]  ;;  %799 = vmatpush.bf16.msra.mxu1 %v1778_v7  ;;  %v1770_v16 = vor.u32 %v2452_v13, %v1769_v11  ;;  %v2434_v19 = vld [vmem:[#allocation2 + $0x54] sm:$0xf0] }
  0x12   :  { %812 = vmatpush.bf16.msra.mxu2 %v1842_v8  ;;  %v1834_v17 = vor.u32 %v2468_v15, %v1833_v14  ;;  %v1761_v20 = vld [vmem:[#allocation2 + $0xd0] sm:$0xf]  ;;  %v2450_v21 = vld [vmem:[#allocation2 + $0xd4] sm:$0xf0]  ;;  %v1698_v24 = vor.u32 %v2434_v19, %v1697_v18  ;;  %v1689_v25 = vld [vmem:[#allocation2 + $0x40] sm:$0xf] }
  0x13   :  { %v1825_v22 = vld [vmem:[#allocation2 + $0x150] sm:$0xf]  ;;  %v2466_v23 = vld [vmem:[#allocation2 + $0x154] sm:$0xf0]  ;;  %v2432_v26 = vld [vmem:[#allocation2 + $0x44] sm:$0xf0]  ;;  %v1762_v27 = vor.u32 %v2450_v21, %v1761_v20 }
  0x14   :  { %787 = vmatpush.bf16.msra.mxu0 %v1706_v12  ;;  %v1826_v28 = vor.u32 %v2466_v23, %v1825_v22  ;;  %v1753_v29 = vld [vmem:[#allocation2 + $0xc0] sm:$0xf]  ;;  %v1905_v30 = vld [vmem:[#allocation2 + $0x1f0] sm:$0xf]  ;;  %v2486_v31 = vld [vmem:[#allocation2 + $0x1f4] sm:$0xf0]  ;;  %v1690_v37 = vor.u32 %v2432_v26, %v1689_v25 }
  0x15   :  { %800 = vmatpush.bf16.msra.mxu1 %v1770_v16  ;;  %v2448_v32 = vld [vmem:[#allocation2 + $0xc4] sm:$0xf0]  ;;  %v1817_v33 = vld [vmem:[#allocation2 + $0x140] sm:$0xf]  ;;  %v1906_v35 = vor.u32 %v2486_v31, %v1905_v30  ;;  %v1681_v38 = vld [vmem:[#allocation2 + $0x30] sm:$0xf] }
  0x16   :  { %813 = vmatpush.bf16.msra.mxu2 %v1834_v17  ;;  %v2464_v34 = vld [vmem:[#allocation2 + $0x144] sm:$0xf0]  ;;  %v1897_v36 = vld [vmem:[#allocation2 + $0x1e0] sm:$0xf]  ;;  %v2430_v39 = vld [vmem:[#allocation2 + $0x34] sm:$0xf0]  ;;  %v1754_v41 = vor.u32 %v2448_v32, %v1753_v29 }
  0x17   :  { %825 = vmatpush.bf16.msra.mxu3 %v1906_v35  ;;  %v2484_v40 = vld [vmem:[#allocation2 + $0x1e4] sm:$0xf0]  ;;  %v1818_v42 = vor.u32 %v2464_v34, %v1817_v33  ;;  %v1745_v43 = vld [vmem:[#allocation2 + $0xb0] sm:$0xf]  ;;  %v2446_v44 = vld [vmem:[#allocation2 + $0xb4] sm:$0xf0]  ;;  %v1682_v50 = vor.u32 %v2430_v39, %v1681_v38 }
  0x18   :  { %788 = vmatpush.bf16.msra.mxu0 %v1698_v24  ;;  %v1809_v45 = vld [vmem:[#allocation2 + $0x130] sm:$0xf]  ;;  %v1898_v46 = vor.u32 %v2484_v40, %v1897_v36  ;;  %v2462_v47 = vld [vmem:[#allocation2 + $0x134] sm:$0xf0]  ;;  %v1673_v51 = vld [vmem:[#allocation2 + $0x20] sm:$0xf]  ;;  %v1746_v54 = vor.u32 %v2446_v44, %v1745_v43 }
  0x19   :  { %801 = vmatpush.bf16.msra.mxu1 %v1762_v27  ;;  %v1889_v48 = vld [vmem:[#allocation2 + $0x1d0] sm:$0xf]  ;;  %v2482_v49 = vld [vmem:[#allocation2 + $0x1d4] sm:$0xf0]  ;;  %v2428_v52 = vld [vmem:[#allocation2 + $0x24] sm:$0xf0]  ;;  %v1810_v55 = vor.u32 %v2462_v47, %v1809_v45 }
  0x1a   :  { %814 = vmatpush.bf16.msra.mxu2 %v1826_v28  ;;  %v1890_v53 = vor.u32 %v2482_v49, %v1889_v48  ;;  %v1737_v56 = vld [vmem:[#allocation2 + $0xa0] sm:$0xf]  ;;  %v2480_v58 = vld [vmem:[#allocation2 + $0x1c4] sm:$0xf0]  ;;  %v1674_v62 = vor.u32 %v2428_v52, %v1673_v51  ;;  %v1665_v63 = vld [vmem:[#allocation2 + $0x10] sm:$0xf] }
  0x1b   :  { %826 = vmatpush.bf16.msra.mxu3 %v1898_v46  ;;  %v1881_v57 = vld [vmem:[#allocation2 + $0x1c0] sm:$0xf]  ;;  %v2444_v59 = vld [vmem:[#allocation2 + $0xa4] sm:$0xf0]  ;;  %v2426_v0 = vld [vmem:[#allocation2 + $0x14] sm:$0xf0] }
  0x1c   :  { %789 = vmatpush.bf16.msra.mxu0 %v1690_v37  ;;  %v1801_v60 = vld [vmem:[#allocation2 + $0x120] sm:$0xf]  ;;  %v2460_v61 = vld [vmem:[#allocation2 + $0x124] sm:$0xf0]  ;;  %v1882_v1 = vor.u32 %v2480_v58, %v1881_v57  ;;  %v1738_v2 = vor.u32 %v2444_v59, %v1737_v56  ;;  %v1729_v4 = vld [vmem:[#allocation2 + $0x90] sm:$0xf]  ;;  %v1666_v10 = vor.u32 %v2426_v0, %v1665_v63 }
  0x1d   :  { %802 = vmatpush.bf16.msra.mxu1 %v1754_v41  ;;  %v1802_v3 = vor.u32 %v2460_v61, %v1801_v60  ;;  %v1873_v5 = vld [vmem:[#allocation2 + $0x1b0] sm:$0xf]  ;;  %v2478_v6 = vld [vmem:[#allocation2 + $0x1b4] sm:$0xf0]  ;;  %v1657_v11 = vld [vmem:[#allocation2] sm:$0xf] }
  0x1e   :  { %815 = vmatpush.bf16.msra.mxu2 %v1818_v42  ;;  %v2442_v7 = vld [vmem:[#allocation2 + $0x94] sm:$0xf0]  ;;  %v1793_v8 = vld [vmem:[#allocation2 + $0x110] sm:$0xf]  ;;  %v2424_v12 = vld [vmem:[#allocation2 + $0x4] sm:$0xf0]  ;;  %v1874_v14 = vor.u32 %v2478_v6, %v1873_v5 }
  0x1f   :  { %827 = vmatpush.bf16.msra.mxu3 %v1890_v53  ;;  %v2458_v9 = vld [vmem:[#allocation2 + $0x114] sm:$0xf0]  ;;  %v1721_v13 = vld [vmem:[#allocation2 + $0x80] sm:$0xf]  ;;  %v1730_v15 = vor.u32 %v2442_v7, %v1729_v4  ;;  %v2440_v17 = vld [vmem:[#allocation2 + $0x84] sm:$0xf0]  ;;  %v1658_v26 = vor.u32 %v2424_v12, %v1657_v11 }
  0x20   :  { %790 = vmatpush.bf16.msra.mxu0 %v1682_v50  ;;  %v1794_v16 = vor.u32 %v2458_v9, %v1793_v8  ;;  %v1865_v18 = vld [vmem:[#allocation2 + $0x1a0] sm:$0xf]  ;;  %v2476_v19 = vld [vmem:[#allocation2 + $0x1a4] sm:$0xf0]  ;;  %v1969_v22 = vld [vmem:[#allocation2 + $0x270] sm:$0xf]  ;;  %v1722_v30 = vor.u32 %v2440_v17, %v1721_v13 }
  0x21   :  { %803 = vmatpush.bf16.msra.mxu1 %v1746_v54  ;;  %v1785_v20 = vld [vmem:[#allocation2 + $0x100] sm:$0xf]  ;;  %v2456_v21 = vld [vmem:[#allocation2 + $0x104] sm:$0xf0]  ;;  %v2502_v23 = vld [vmem:[#allocation2 + $0x274] sm:$0xf0]  ;;  %v1866_v29 = vor.u32 %v2476_v19, %v1865_v18 }
  0x22   :  { %816 = vmatpush.bf16.msra.mxu2 %v1810_v55  ;;  %v2033_v24 = vld [vmem:[#allocation2 + $0x2f0] sm:$0xf]  ;;  %v2518_v25 = vld [vmem:[#allocation2 + $0x2f4] sm:$0xf0]  ;;  %v1786_v31 = vor.u32 %v2456_v21, %v1785_v20  ;;  %v1970_v34 = vor.u32 %v2502_v23, %v1969_v22  ;;  %v1961_v36 = vld [vmem:[#allocation2 + $0x260] sm:$0xf] }
  0x23   :  { %828 = vmatpush.bf16.msra.mxu3 %v1882_v1  ;;  %v2097_v27 = vld [vmem:[#allocation2 + $0x370] sm:$0xf]  ;;  %v2534_v28 = vld [vmem:[#allocation2 + $0x374] sm:$0xf0]  ;;  %v2034_v35 = vor.u32 %v2518_v25, %v2033_v24  ;;  %v2500_v37 = vld [vmem:[#allocation2 + $0x264] sm:$0xf0] }
  0x24   :  { %791 = vmatpush.bf16.msra.mxu0 %v1674_v62  ;;  %v1857_v32 = vld [vmem:[#allocation2 + $0x190] sm:$0xf]  ;;  %v2474_v33 = vld [vmem:[#allocation2 + $0x194] sm:$0xf0]  ;;  %v2098_v38 = vor.u32 %v2534_v28, %v2097_v27  ;;  %v2025_v39 = vld [vmem:[#allocation2 + $0x2e0] sm:$0xf]  ;;  %v1962_v46 = vor.u32 %v2500_v37, %v1961_v36 }
  0x25   :  { %804 = vmatpush.bf16.msra.mxu1 %v1738_v2  ;;  %v2516_v40 = vld [vmem:[#allocation2 + $0x2e4] sm:$0xf0]  ;;  %v2089_v42 = vld [vmem:[#allocation2 + $0x360] sm:$0xf]  ;;  %v1858_v44 = vor.u32 %v2474_v33, %v1857_v32  ;;  %v1953_v51 = vld [vmem:[#allocation2 + $0x250] sm:$0xf] }
  0x26   :  { %817 = vmatpush.bf16.msra.mxu2 %v1802_v3  ;;  %v80_v41 = vld [vmem:[%s2878_s0 + $0x8] sm:$0xff]  ;;  %v1849_v47 = vld [vmem:[#allocation2 + $0x180] sm:$0xf]  ;;  %v2026_v50 = vor.u32 %v2516_v40, %v2025_v39  ;;  %v2437_v52 = vld [vmem:[#allocation2 + $0x74] sm:$0xf] }
  0x27   :  { %829 = vmatpush.bf16.msra.mxu3 %v1874_v14  ;;  %v2532_v43 = vld [vmem:[#allocation2 + $0x364] sm:$0xf0]  ;;  %v207_v45 = vunpack.c.l.b16 %v80_v41  ;;  %v79_v49 = vld [vmem:[%s2878_s0] sm:$0xff]  ;;  %v1715_v53 = vld [vmem:[#allocation2 + $0x78] sm:$0xf0]  ;;  %v208_v61 = vunpack.c.h.b16 %v80_v41 }
  0x28   :  { %792 = vmatpush.bf16.msra.mxu0 %v1666_v10  ;;  %v2472_v48 = vld [vmem:[#allocation2 + $0x184] sm:$0xf0]  ;;  %v205_v55 = vunpack.c.l.b16 %v79_v49  ;;  %v206_v56 = vunpack.c.h.b16 %v79_v49  ;;  %v2090_v57 = vor.u32 %v2532_v43, %v2089_v42  ;;  %v2498_v58 = vld [vmem:[#allocation2 + $0x254] sm:$0xf0]  ;;  %v2017_v59 = vld [vmem:[#allocation2 + $0x2d0] sm:$0xf]  ;;  %v1718_v3 = vor.u32 %v2437_v52, %v1715_v53 }
  0x29   :  { %805 = vmatpush.bf16.msra.mxu1 %v1730_v15  ;;  %v2771_v54 = vpack.c.b16 %v207_v45, %v207_v45  ;;  %v2514_v60 = vld [vmem:[#allocation2 + $0x2d4] sm:$0xf0]  ;;  %v2081_v62 = vld [vmem:[#allocation2 + $0x350] sm:$0xf]  ;;  %v1850_v0 = vor.u32 %v2472_v48, %v1849_v47  ;;  %v1954_v4 = vor.u32 %v2498_v58, %v1953_v51  ;;  %v1945_v6 = vld [vmem:[#allocation2 + $0x240] sm:$0xf]  ;;  %v2779_v13 = vpack.c.b16 %v208_v61, %v208_v61 }
  0x2a   :  { %818 = vmatpush.bf16.msra.mxu2 %v1794_v16  ;;  %v2530_v63 = vld [vmem:[#allocation2 + $0x354] sm:$0xf0]  ;;  %v2774_v1 = vpack.c.b16 %v205_v55, %v205_v55  ;;  %v2776_v2 = vpack.c.b16 %v206_v56, %v206_v56  ;;  %v2018_v5 = vor.u32 %v2514_v60, %v2017_v59  ;;  %v2435_v7 = vld [vmem:[#allocation2 + $0x64] sm:$0xf]  ;;  %v1707_v8 = vld [vmem:[#allocation2 + $0x68] sm:$0xf0] }
  0x2b   :  { %830 = vmatpush.bf16.msra.mxu3 %v1866_v29  ;;  %v2082_v9 = vor.u32 %v2530_v63, %v2081_v62  ;;  %v2496_v10 = vld [vmem:[#allocation2 + $0x244] sm:$0xf0]  ;;  %v2009_v11 = vld [vmem:[#allocation2 + $0x2c0] sm:$0xf]  ;;  %v1710_v16 = vor.u32 %v2435_v7, %v1707_v8  ;;  %v1937_v19 = vld [vmem:[#allocation2 + $0x230] sm:$0xf] }
  0x2c   :  { %793 = vmatpush.bf16.msra.mxu0 %v1658_v26  ;;  %v2512_v12 = vld [vmem:[#allocation2 + $0x2c4] sm:$0xf0]  ;;  %v2073_v14 = vld [vmem:[#allocation2 + $0x340] sm:$0xf]  ;;  %v1946_v17 = vor.u32 %v2496_v10, %v1945_v6  ;;  %v2433_v20 = vld [vmem:[#allocation2 + $0x54] sm:$0xf] }
  0x2d   :  { %806 = vmatpush.bf16.msra.mxu1 %v1722_v30  ;;  %v2528_v15 = vld [vmem:[#allocation2 + $0x344] sm:$0xf0]  ;;  %v2010_v18 = vor.u32 %v2512_v12, %v2009_v11  ;;  %v1699_v21 = vld [vmem:[#allocation2 + $0x58] sm:$0xf0]  ;;  %v2494_v23 = vld [vmem:[#allocation2 + $0x234] sm:$0xf0] }
  0x2e   :  { %819 = vmatpush.bf16.msra.mxu2 %v1786_v31  ;;  %v2074_v22 = vor.u32 %v2528_v15, %v2073_v14  ;;  %v2001_v24 = vld [vmem:[#allocation2 + $0x2b0] sm:$0xf]  ;;  %v2510_v25 = vld [vmem:[#allocation2 + $0x2b4] sm:$0xf0]  ;;  %v1702_v28 = vor.u32 %v2433_v20, %v1699_v21  ;;  %v1938_v29 = vor.u32 %v2494_v23, %v1937_v19  ;;  %v1929_v31 = vld [vmem:[#allocation2 + $0x220] sm:$0xf] }
  0x2f   :  { %831 = vmatpush.bf16.msra.mxu3 %v1858_v44  ;;  %794 = vmatmul.bf16.vlgmr.msra.gmra.mxu0 %v2774_v1  ;;  %v2065_v26 = vld [vmem:[#allocation2 + $0x330] sm:$0xf]  ;;  %v2526_v27 = vld [vmem:[#allocation2 + $0x334] sm:$0xf0]  ;;  %v2002_v30 = vor.u32 %v2510_v25, %v2001_v24  ;;  %v2431_v32 = vld [vmem:[#allocation2 + $0x44] sm:$0xf] }
  0x30   :  { %838 = vmatpush.bf16.msrb.mxu0 %v1970_v34  ;;  %807 = vmatmul.bf16.vlgmr.msra.gmra.mxu1 %v2776_v2  ;;  %v1691_v33 = vld [vmem:[#allocation2 + $0x48] sm:$0xf0]  ;;  %v2066_v34 = vor.u32 %v2526_v27, %v2065_v26  ;;  %v1993_v36 = vld [vmem:[#allocation2 + $0x2a0] sm:$0xf]  ;;  %v2508_v37 = vld [vmem:[#allocation2 + $0x2a4] sm:$0xf0] }
  0x31   :  { %851 = vmatpush.bf16.msrb.mxu1 %v2034_v35  ;;  %820 = vmatmul.bf16.vlgmr.msra.gmra.mxu2 %v2771_v54  ;;  %v2492_v35 = vld [vmem:[#allocation2 + $0x224] sm:$0xf0]  ;;  %v1694_v40 = vor.u32 %v2431_v32, %v1691_v33  ;;  %v1994_v42 = vor.u32 %v2508_v37, %v1993_v36  ;;  %v1921_v43 = vld [vmem:[#allocation2 + $0x210] sm:$0xf]  ;;  %v2429_v44 = vld [vmem:[#allocation2 + $0x34] sm:$0xf] }
  0x32   :  { %864 = vmatpush.bf16.msrb.mxu2 %v2098_v38  ;;  %v2057_v38 = vld [vmem:[#allocation2 + $0x320] sm:$0xf]  ;;  %v2524_v39 = vld [vmem:[#allocation2 + $0x324] sm:$0xf0]  ;;  %v1930_v41 = vor.u32 %v2492_v35, %v1929_v31  ;;  %v1683_v45 = vld [vmem:[#allocation2 + $0x38] sm:$0xf0] }
  0x33   :  { %832 = vmatpush.bf16.msra.mxu3 %v1850_v0  ;;  %v2490_v47 = vld [vmem:[#allocation2 + $0x214] sm:$0xf0]  ;;  %v1985_v48 = vld [vmem:[#allocation2 + $0x290] sm:$0xf]  ;;  %v1913_v52 = vld [vmem:[#allocation2 + $0x200] sm:$0xf] }
  0x34   :  { %839 = vmatpush.bf16.msrb.mxu0 %v1962_v46  ;;  %v2058_v46 = vor.u32 %v2524_v39, %v2057_v38  ;;  %v2506_v49 = vld [vmem:[#allocation2 + $0x294] sm:$0xf0]  ;;  %v2488_v53 = vld [vmem:[#allocation2 + $0x204] sm:$0xf0]  ;;  %v1977_v55 = vld [vmem:[#allocation2 + $0x280] sm:$0xf]  ;;  %v1922_v58 = vor.u32 %v2490_v47, %v1921_v43 }
  0x35   :  { %852 = vmatpush.bf16.msrb.mxu1 %v2026_v50  ;;  %v2049_v50 = vld [vmem:[#allocation2 + $0x310] sm:$0xf]  ;;  %v2522_v51 = vld [vmem:[#allocation2 + $0x314] sm:$0xf0]  ;;  %v2504_v56 = vld [vmem:[#allocation2 + $0x284] sm:$0xf0]  ;;  %v1986_v59 = vor.u32 %v2506_v49, %v1985_v48  ;;  %v1914_v15 = vor.u32 %v2488_v53, %v1913_v52 }
  0x36   :  { %865 = vmatpush.bf16.msrb.mxu2 %v2090_v57  ;;  %833 = vmatmul.bf16.vlgmr.msra.gmra.mxu3 %v2779_v13  ;;  %v1686_v57 = vor.u32 %v2429_v44, %v1683_v45  ;;  %v81_v60 = vld [vmem:[%s2878_s0 + $0x10] sm:$0xff]  ;;  %v2427_v61 = vld [vmem:[#allocation2 + $0x24] sm:$0xf]  ;;  %v1675_v62 = vld [vmem:[#allocation2 + $0x28] sm:$0xf0]  ;;  %v2050_v63 = vor.u32 %v2522_v51, %v2049_v50 }
  0x37   :  { %877 = vmatpush.bf16.msrb.mxu3 %v1718_v3  ;;  %v2041_v0 = vld [vmem:[#allocation2 + $0x300] sm:$0xf]  ;;  %v2520_v3 = vld [vmem:[#allocation2 + $0x304] sm:$0xf0]  ;;  %v1779_v6 = vld [vmem:[#allocation2 + $0xf8] sm:$0xf0]  ;;  %v1678_v10 = vor.u32 %v2427_v61, %v1675_v62  ;;  %v210_v11 = vunpack.c.h.b16 %v81_v60 }
  0x38   :  { %840 = vmatpush.bf16.msrb.mxu0 %v1954_v4  ;;  %v82_v4 = vld [vmem:[%s2878_s0 + $0x18] sm:$0xf]  ;;  %v2469_v7 = vld [vmem:[#allocation2 + $0x174] sm:$0xf]  ;;  %v1843_v8 = vld [vmem:[#allocation2 + $0x178] sm:$0xf0] }
  0x39   :  { %853 = vmatpush.bf16.msrb.mxu1 %v2018_v5  ;;  %v2453_v5 = vld [vmem:[#allocation2 + $0xf4] sm:$0xf]  ;;  %v1907_v14 = vld [vmem:[#allocation2 + $0x1f8] sm:$0xf0]  ;;  %v2451_v23 = vld [vmem:[#allocation2 + $0xe4] sm:$0xf] }
  0x3a   :  { %866 = vmatpush.bf16.msrb.mxu2 %v2082_v9  ;;  %v209_v9 = vunpack.c.l.b16 %v81_v60  ;;  %v2485_v12 = vld [vmem:[#allocation2 + $0x1f4] sm:$0xf]  ;;  %v1782_v19 = vor.u32 %v2453_v5, %v1779_v6  ;;  %v1667_v21 = vld [vmem:[#allocation2 + $0x18] sm:$0xf0]  ;;  %v1771_v24 = vld [vmem:[#allocation2 + $0xe8] sm:$0xf0] }
  0x3b   :  { %878 = vmatpush.bf16.msrb.mxu3 %v1710_v16  ;;  %v1978_v16 = vor.u32 %v2504_v56, %v1977_v55  ;;  %v2425_v20 = vld [vmem:[#allocation2 + $0x14] sm:$0xf]  ;;  %v2467_v25 = vld [vmem:[#allocation2 + $0x164] sm:$0xf]  ;;  %v1910_v26 = vor.u32 %v2485_v12, %v1907_v14  ;;  %v1899_v31 = vld [vmem:[#allocation2 + $0x1e8] sm:$0xf0]  ;;  %v1774_v35 = vor.u32 %v2451_v23, %v1771_v24 }
  0x3c   :  { %841 = vmatpush.bf16.msrb.mxu0 %v1946_v17  ;;  %v211_v17 = vunpack.c.l.b16 %v82_v4  ;;  %v2789_v27 = vpack.c.b16 %v209_v9, %v209_v9  ;;  %v1670_v33 = vor.u32 %v2425_v20, %v1667_v21  ;;  %v1763_v36 = vld [vmem:[#allocation2 + $0xd8] sm:$0xf0]  ;;  %v2423_v37 = vld [vmem:[#allocation2 + $0x4] sm:$0xf]  ;;  %v1659_v38 = vld [vmem:[#allocation2 + $0x8] sm:$0xf0] }
  0x3d   :  { %854 = vmatpush.bf16.msrb.mxu1 %v2010_v18  ;;  %v2042_v18 = vor.u32 %v2520_v3, %v2041_v0  ;;  %v1827_v44 = vld [vmem:[#allocation2 + $0x158] sm:$0xf0]  ;;  %v2481_v45 = vld [vmem:[#allocation2 + $0x1d4] sm:$0xf]  ;;  %v1662_v47 = vor.u32 %v2423_v37, %v1659_v38  ;;  %v2447_v49 = vld [vmem:[#allocation2 + $0xc4] sm:$0xf] }
  0x3e   :  { %867 = vmatpush.bf16.msrb.mxu2 %v2074_v22  ;;  %v1846_v22 = vor.u32 %v2469_v7, %v1843_v8  ;;  %v2793_v32 = vpack.c.b16 %v211_v17, %v211_v17  ;;  %v1755_v50 = vld [vmem:[#allocation2 + $0xc8] sm:$0xf0]  ;;  %v2463_v53 = vld [vmem:[#allocation2 + $0x144] sm:$0xf]  ;;  %v2445_v62 = vld [vmem:[#allocation2 + $0xb4] sm:$0xf] }
  0x3f   :  { %879 = vmatpush.bf16.msrb.mxu3 %v1702_v28  ;;  %v1835_v28 = vld [vmem:[#allocation2 + $0x168] sm:$0xf0]  ;;  %v2499_v55 = vld [vmem:[#allocation2 + $0x264] sm:$0xf]  ;;  %v1758_v61 = vor.u32 %v2447_v49, %v1755_v50  ;;  %v2461_v4 = vld [vmem:[#allocation2 + $0x134] sm:$0xf] }
  0x40   :  { %842 = vmatpush.bf16.msrb.mxu0 %v1938_v29  ;;  %v2791_v29 = vpack.c.b16 %v210_v11, %v210_v11  ;;  %v1838_v39 = vor.u32 %v2467_v25, %v1835_v28  ;;  %v1963_v56 = vld [vmem:[#allocation2 + $0x268] sm:$0xf0]  ;;  %v2497_v5 = vld [vmem:[#allocation2 + $0x254] sm:$0xf]  ;;  %v1955_v6 = vld [vmem:[#allocation2 + $0x258] sm:$0xf0] }
  0x41   :  { %855 = vmatpush.bf16.msrb.mxu1 %v2002_v30  ;;  %v2483_v30 = vld [vmem:[#allocation2 + $0x1e4] sm:$0xf]  ;;  %v1883_v60 = vld [vmem:[#allocation2 + $0x1c8] sm:$0xf0]  ;;  %v1966_v0 = vor.u32 %v2499_v55, %v1963_v56  ;;  %v1811_v8 = vld [vmem:[#allocation2 + $0x138] sm:$0xf0] }
  0x42   :  { %868 = vmatpush.bf16.msrb.mxu2 %v2066_v34  ;;  %v2449_v34 = vld [vmem:[#allocation2 + $0xd4] sm:$0xf]  ;;  %v1902_v43 = vor.u32 %v2483_v30, %v1899_v31  ;;  %v2443_v12 = vld [vmem:[#allocation2 + $0xa4] sm:$0xf]  ;;  %v1739_v14 = vld [vmem:[#allocation2 + $0xa8] sm:$0xf0] }
  0x43   :  { %880 = vmatpush.bf16.msrb.mxu3 %v1694_v40  ;;  %v2465_v40 = vld [vmem:[#allocation2 + $0x154] sm:$0xf]  ;;  %v1766_v48 = vor.u32 %v2449_v34, %v1763_v36  ;;  %v2459_v17 = vld [vmem:[#allocation2 + $0x124] sm:$0xf]  ;;  %v1803_v21 = vld [vmem:[#allocation2 + $0x128] sm:$0xf0]  ;;  %v1742_v24 = vor.u32 %v2443_v12, %v1739_v14 }
  0x44   :  { %843 = vmatpush.bf16.msrb.mxu0 %v1930_v41  ;;  %v2501_v41 = vld [vmem:[#allocation2 + $0x274] sm:$0xf]  ;;  %v1830_v52 = vor.u32 %v2465_v40, %v1827_v44  ;;  %v1867_v23 = vld [vmem:[#allocation2 + $0x1a8] sm:$0xf0]  ;;  %v1731_v25 = vld [vmem:[#allocation2 + $0x98] sm:$0xf0]  ;;  %v1806_v28 = vor.u32 %v2459_v17, %v1803_v21 }
  0x45   :  { %856 = vmatpush.bf16.msrb.mxu1 %v1994_v42  ;;  %v1971_v42 = vld [vmem:[#allocation2 + $0x278] sm:$0xf0]  ;;  %v2477_v9 = vld [vmem:[#allocation2 + $0x1b4] sm:$0xf]  ;;  %v1723_v40 = vld [vmem:[#allocation2 + $0x88] sm:$0xf0] }
  0x46   :  { %869 = vmatpush.bf16.msrb.mxu2 %v2058_v46  ;;  %v1891_v46 = vld [vmem:[#allocation2 + $0x1d8] sm:$0xf0]  ;;  %v1974_v51 = vor.u32 %v2501_v41, %v1971_v42  ;;  %v2457_v30 = vld [vmem:[#allocation2 + $0x114] sm:$0xf]  ;;  %v2455_v41 = vld [vmem:[#allocation2 + $0x104] sm:$0xf] }
  0x47   :  { %881 = vmatpush.bf16.msrb.mxu3 %v1686_v57  ;;  %v1894_v57 = vor.u32 %v2481_v45, %v1891_v46  ;;  %v2493_v31 = vld [vmem:[#allocation2 + $0x234] sm:$0xf]  ;;  %v1859_v37 = vld [vmem:[#allocation2 + $0x198] sm:$0xf0]  ;;  %v1787_v44 = vld [vmem:[#allocation2 + $0x108] sm:$0xf0] }
  0x48   :  { %844 = vmatpush.bf16.msrb.mxu0 %v1922_v58  ;;  %v1819_v58 = vld [vmem:[#allocation2 + $0x148] sm:$0xf0]  ;;  %v2473_v36 = vld [vmem:[#allocation2 + $0x194] sm:$0xf]  ;;  %v2491_v45 = vld [vmem:[#allocation2 + $0x224] sm:$0xf] }
  0x49   :  { %857 = vmatpush.bf16.msrb.mxu1 %v1986_v59  ;;  %v2479_v59 = vld [vmem:[#allocation2 + $0x1c4] sm:$0xf]  ;;  %v1822_v3 = vor.u32 %v2463_v53, %v1819_v58  ;;  %v1931_v46 = vld [vmem:[#allocation2 + $0x228] sm:$0xf0]  ;;  %v2035_v49 = vld [vmem:[#allocation2 + $0x2f8] sm:$0xf0] }
  0x4a   :  { %870 = vmatpush.bf16.msrb.mxu2 %v2050_v63  ;;  %v1747_v63 = vld [vmem:[#allocation2 + $0xb8] sm:$0xf0]  ;;  %v1886_v7 = vor.u32 %v2479_v59, %v1883_v60  ;;  %v2533_v50 = vld [vmem:[#allocation2 + $0x374] sm:$0xf]  ;;  %v1851_v53 = vld [vmem:[#allocation2 + $0x188] sm:$0xf0]  ;;  %v1934_v56 = vor.u32 %v2491_v45, %v1931_v46 }
  0x4b   :  { %882 = vmatpush.bf16.msrb.mxu3 %v1678_v10  ;;  %v1875_v10 = vld [vmem:[#allocation2 + $0x1b8] sm:$0xf0]  ;;  %v1750_v11 = vor.u32 %v2445_v62, %v1747_v63  ;;  %v2489_v59 = vld [vmem:[#allocation2 + $0x214] sm:$0xf]  ;;  %v2515_v62 = vld [vmem:[#allocation2 + $0x2e4] sm:$0xf] }
  0x4c   :  { %845 = vmatpush.bf16.msrb.mxu0 %v1914_v15  ;;  %v1958_v15 = vor.u32 %v2497_v5, %v1955_v6  ;;  %v1878_v20 = vor.u32 %v2477_v9, %v1875_v10  ;;  %v1923_v60 = vld [vmem:[#allocation2 + $0x218] sm:$0xf0]  ;;  %v2027_v63 = vld [vmem:[#allocation2 + $0x2e8] sm:$0xf0]  ;;  %v2487_v6 = vld [vmem:[#allocation2 + $0x204] sm:$0xf] }
  0x4d   :  { %858 = vmatpush.bf16.msrb.mxu1 %v1978_v16  ;;  %v1814_v16 = vor.u32 %v2461_v4, %v1811_v8  ;;  %v2091_v4 = vld [vmem:[#allocation2 + $0x368] sm:$0xf0]  ;;  %v1926_v5 = vor.u32 %v2489_v59, %v1923_v60  ;;  %v2161_v9 = vld [vmem:[#allocation4 + $0x70] sm:$0xf]  ;;  %v2550_v10 = vld [vmem:[#allocation4 + $0x74] sm:$0xf0] }
  0x4e   :  { %871 = vmatpush.bf16.msrb.mxu2 %v2042_v18  ;;  %v2495_v18 = vld [vmem:[#allocation2 + $0x244] sm:$0xf]  ;;  %v1915_v8 = vld [vmem:[#allocation2 + $0x208] sm:$0xf0]  ;;  %v2513_v12 = vld [vmem:[#allocation2 + $0x2d4] sm:$0xf] }
  0x4f   :  { %846 = vmatmul.bf16.vlgmr.msrb.gmra.mxu0 %v2789_v27  ;;  %883 = vmatpush.bf16.msrb.mxu3 %v1670_v33  ;;  %v1939_v33 = vld [vmem:[#allocation2 + $0x238] sm:$0xf0]  ;;  %v2511_v21 = vld [vmem:[#allocation2 + $0x2c4] sm:$0xf]  ;;  %v2043_v46 = vld [vmem:[#allocation2 + $0x308] sm:$0xf0] }
  0x50   :  { %890 = vmatpush.bf16.msra.mxu0 %v1782_v19  ;;  %859 = vmatmul.bf16.vlgmr.msrb.gmra.mxu1 %v2791_v29  ;;  %v1947_v19 = vld [vmem:[#allocation2 + $0x248] sm:$0xf0]  ;;  %v1942_v42 = vor.u32 %v2493_v31, %v1939_v33  ;;  %v2019_v14 = vld [vmem:[#allocation2 + $0x2d8] sm:$0xf0]  ;;  %v2507_v31 = vld [vmem:[#allocation2 + $0x2a4] sm:$0xf] }
  0x51   :  { %903 = vmatpush.bf16.msra.mxu1 %v1846_v22  ;;  %872 = vmatmul.bf16.vlgmr.msrb.gmra.mxu2 %v2793_v32  ;;  %v2475_v22 = vld [vmem:[#allocation2 + $0x1a4] sm:$0xf]  ;;  %v2083_v17 = vld [vmem:[#allocation2 + $0x358] sm:$0xf0]  ;;  %v1995_v33 = vld [vmem:[#allocation2 + $0x2a8] sm:$0xf0] }
  0x52   :  { %916 = vmatpush.bf16.msra.mxu2 %v1910_v26  ;;  %v1950_v26 = vor.u32 %v2495_v18, %v1947_v19  ;;  %v1870_v34 = vor.u32 %v2475_v22, %v1867_v23  ;;  %v1918_v18 = vor.u32 %v2487_v6, %v1915_v8  ;;  %v2022_v19 = vor.u32 %v2513_v12, %v2019_v14  ;;  %v2011_v22 = vld [vmem:[#allocation2 + $0x2c8] sm:$0xf0]  ;;  %v2527_v23 = vld [vmem:[#allocation2 + $0x344] sm:$0xf]  ;;  %v2145_v59 = vld [vmem:[#allocation4 + $0x50] sm:$0xf] }
  0x53   :  { %884 = vmatpush.bf16.msrb.mxu3 %v1662_v47  ;;  %v1862_v47 = vor.u32 %v2473_v36, %v1859_v37  ;;  %v1998_v36 = vor.u32 %v2507_v31, %v1995_v33  ;;  %v2519_v45 = vld [vmem:[#allocation2 + $0x304] sm:$0xf]  ;;  %v2546_v60 = vld [vmem:[#allocation4 + $0x54] sm:$0xf0]  ;;  %v2121_v14 = vld [vmem:[#allocation4 + $0x20] sm:$0xf] }
  0x54   :  { %891 = vmatpush.bf16.msra.mxu0 %v1774_v35  ;;  %v1795_v35 = vld [vmem:[#allocation2 + $0x118] sm:$0xf0]  ;;  %v2542_v8 = vld [vmem:[#allocation4 + $0x34] sm:$0xf0]  ;;  %v2107_v31 = vld [vmem:[#allocation4 + $0x8] sm:$0xf0] }
  0x55   :  { %904 = vmatpush.bf16.msra.mxu1 %v1838_v39  ;;  %v2439_v39 = vld [vmem:[#allocation2 + $0x84] sm:$0xf]  ;;  %v2808_v33 = vld [vmem:[%s2880_s2] sm:$0x3] }
  0x56   :  { %917 = vmatpush.bf16.msra.mxu2 %v1902_v43  ;;  %885 = vmatmul.bf16.vlgmr.msrb.gmra.mxu3 %v2774_v1  ;;  %v2441_v1 = vld [vmem:[#allocation2 + $0x94] sm:$0xf]  ;;  %v1798_v43 = vor.u32 %v2457_v30, %v1795_v35  ;;  %v1726_v55 = vor.u32 %v2439_v39, %v1723_v40  ;;  %v2059_v35 = vld [vmem:[#allocation2 + $0x328] sm:$0xf0]  ;;  %v1987_v39 = vld [vmem:[#allocation2 + $0x298] sm:$0xf0] }
  0x57   :  { %929 = vmatpush.bf16.msra.mxu3 %v1974_v51  ;;  %v1734_v38 = vor.u32 %v2441_v1, %v1731_v25  ;;  %v2099_v51 = vld [vmem:[#allocation2 + $0x378] sm:$0xf0]  ;;  %v2509_v25 = vld [vmem:[#allocation2 + $0x2b4] sm:$0xf] }
  0x58   :  { %892 = vmatpush.bf16.msra.mxu0 %v1766_v48  ;;  %v2517_v48 = vld [vmem:[#allocation2 + $0x2f4] sm:$0xf] }
  0x59   :  { %905 = vmatpush.bf16.msra.mxu1 %v1830_v52  ;;  %v2471_v52 = vld [vmem:[#allocation2 + $0x184] sm:$0xf]  ;;  %v2038_v58 = vor.u32 %v2517_v48, %v2035_v49  ;;  %v2521_v40 = vld [vmem:[#allocation2 + $0x314] sm:$0xf]  ;;  %v2163_v48 = vld [vmem:[#allocation4 + $0x78] sm:$0xf0] }
  0x5a   :  { %918 = vmatpush.bf16.msra.mxu2 %v1894_v57  ;;  %v1790_v57 = vor.u32 %v2455_v41, %v1787_v44  ;;  %v2051_v41 = vld [vmem:[#allocation2 + $0x318] sm:$0xf0]  ;;  %v1979_v44 = vld [vmem:[#allocation2 + $0x288] sm:$0xf0] }
  0x5b   :  { %930 = vmatpush.bf16.msra.mxu3 %v1966_v0  ;;  %v1854_v0 = vor.u32 %v2471_v52, %v1851_v53  ;;  %v2153_v52 = vld [vmem:[#allocation4 + $0x60] sm:$0xf]  ;;  %v2548_v53 = vld [vmem:[#allocation4 + $0x64] sm:$0xf0] }
  0x5c   :  { %893 = vmatpush.bf16.msra.mxu0 %v1758_v61  ;;  %v2102_v61 = vor.u32 %v2533_v50, %v2099_v51  ;;  %v2046_v50 = vor.u32 %v2519_v45, %v2043_v46  ;;  %v2225_v46 = vld [vmem:[#allocation4 + $0xf0] sm:$0xf] }
  0x5d   :  { %906 = vmatpush.bf16.msra.mxu1 %v1822_v3  ;;  %v2531_v3 = vld [vmem:[#allocation2 + $0x364] sm:$0xf] }
  0x5e   :  { %919 = vmatpush.bf16.msra.mxu2 %v1886_v7  ;;  %v2030_v7 = vor.u32 %v2515_v62, %v2027_v63  ;;  %v2146_v62 = vor.u32 %v2546_v60, %v2145_v59  ;;  %v2147_v63 = vld [vmem:[#allocation4 + $0x58] sm:$0xf0] }
  0x5f   :  { %931 = vmatpush.bf16.msra.mxu3 %v1958_v15  ;;  %v2162_v15 = vor.u32 %v2550_v10, %v2161_v9  ;;  %v2541_v9 = vld [vmem:[#allocation4 + $0x34] sm:$0xf] }
  0x60   :  { %894 = vmatpush.bf16.msra.mxu0 %v1750_v11  ;;  %v2094_v11 = vor.u32 %v2531_v3, %v2091_v4  ;;  %v2137_v3 = vld [vmem:[#allocation4 + $0x40] sm:$0xf]  ;;  %v2544_v4 = vld [vmem:[#allocation4 + $0x44] sm:$0xf0] }
  0x61   :  { %907 = vmatpush.bf16.msra.mxu1 %v1814_v16  ;;  %v2529_v16 = vld [vmem:[#allocation2 + $0x354] sm:$0xf] }
  0x62   :  { %920 = vmatpush.bf16.msra.mxu2 %v1878_v20  ;;  %v2086_v20 = vor.u32 %v2529_v16, %v2083_v17  ;;  %v2539_v16 = vld [vmem:[#allocation4 + $0x24] sm:$0xf] }
  0x63   :  { %932 = vmatpush.bf16.msra.mxu3 %v1950_v26  ;;  %v2003_v26 = vld [vmem:[#allocation2 + $0x2b8] sm:$0xf0] }
  0x64   :  { %895 = vmatpush.bf16.msra.mxu0 %v1742_v24  ;;  %v2075_v24 = vld [vmem:[#allocation2 + $0x348] sm:$0xf0] }
  0x65   :  { %908 = vmatpush.bf16.msra.mxu1 %v1806_v28  ;;  %v2078_v1 = vor.u32 %v2527_v23, %v2075_v24  ;;  %v2067_v28 = vld [vmem:[#allocation2 + $0x338] sm:$0xf0] }
  0x66   :  { %921 = vmatpush.bf16.msra.mxu2 %v1870_v34  ;;  %v2523_v34 = vld [vmem:[#allocation2 + $0x324] sm:$0xf]  ;;  %v2115_v24 = vld [vmem:[#allocation4 + $0x18] sm:$0xf0] }
  0x67   :  { %933 = vmatpush.bf16.msra.mxu3 %v1942_v42  ;;  %v2062_v37 = vor.u32 %v2523_v34, %v2059_v35  ;;  %v2054_v42 = vor.u32 %v2521_v40, %v2051_v41  ;;  %v197_v35 = vperm.slane %v2808_v33, 0 }
  0x68   :  { %896 = vmatpush.bf16.msra.mxu0 %v1734_v38  ;;  %v2505_v38 = vld [vmem:[#allocation2 + $0x294] sm:$0xf] }
  0x69   :  { %909 = vmatpush.bf16.msra.mxu1 %v1798_v43  ;;  %v2503_v43 = vld [vmem:[#allocation2 + $0x284] sm:$0xf] }
  0x6a   :  { %922 = vmatpush.bf16.msra.mxu2 %v1862_v47  ;;  %v2549_v47 = vld [vmem:[#allocation4 + $0x74] sm:$0xf]  ;;  %v1982_v49 = vor.u32 %v2503_v43, %v1979_v44 }
  0x6b   :  { %934 = vmatpush.bf16.msra.mxu3 %v1934_v56  ;;  %v2166_v51 = vor.u32 %v2549_v47, %v2163_v48  ;;  %v2154_v56 = vor.u32 %v2548_v53, %v2153_v52  ;;  %v2566_v47 = vld [vmem:[#allocation4 + $0xf4] sm:$0xf0]  ;;  %v2565_v48 = vld [vmem:[#allocation4 + $0xf4] sm:$0xf]  ;;  %v2217_v52 = vld [vmem:[#allocation4 + $0xe0] sm:$0xf] }
  0x6c   :  { %897 = vmatpush.bf16.msra.mxu0 %v1726_v55  ;;  %v2547_v55 = vld [vmem:[#allocation4 + $0x64] sm:$0xf]  ;;  %v2564_v53 = vld [vmem:[#allocation4 + $0xe4] sm:$0xf0] }
  0x6d   :  { %910 = vmatpush.bf16.msra.mxu1 %v1790_v57  ;;  %v2155_v57 = vld [vmem:[#allocation4 + $0x68] sm:$0xf0] }
  0x6e   :  { %923 = vmatpush.bf16.msra.mxu2 %v1854_v0 }
  0x6f   :  { %898 = vmatmul.bf16.vlgmr.msra.gmra.mxu0 %v2776_v2  ;;  %935 = vmatpush.bf16.msra.mxu3 %v1926_v5  ;;  %v2014_v2 = vor.u32 %v2511_v21, %v2011_v22  ;;  %v2139_v5 = vld [vmem:[#allocation4 + $0x48] sm:$0xf0]  ;;  %v2538_v21 = vld [vmem:[#allocation4 + $0x14] sm:$0xf0]  ;;  %v2537_v22 = vld [vmem:[#allocation4 + $0x14] sm:$0xf] }
  0x70   :  { %942 = vmatpush.bf16.msrb.mxu0 %v2038_v58  ;;  %911 = vmatmul.bf16.vlgmr.msra.gmra.mxu1 %v2771_v54  ;;  %v2525_v54 = vld [vmem:[#allocation2 + $0x334] sm:$0xf]  ;;  %v2158_v58 = vor.u32 %v2547_v55, %v2155_v57  ;;  %v2219_v57 = vld [vmem:[#allocation4 + $0xe8] sm:$0xf0] }
  0x71   :  { %955 = vmatpush.bf16.msrb.mxu1 %v2102_v61  ;;  %924 = vmatmul.bf16.vlgmr.msra.gmra.mxu2 %v2779_v13  ;;  %v2006_v13 = vor.u32 %v2509_v25, %v2003_v26  ;;  %v2070_v30 = vor.u32 %v2525_v54, %v2067_v28  ;;  %v2545_v61 = vld [vmem:[#allocation4 + $0x54] sm:$0xf]  ;;  %v2105_v26 = vld [vmem:[#allocation4] sm:$0xf]  ;;  %v2536_v54 = vld [vmem:[#allocation4 + $0x4] sm:$0xf0] }
  0x72   :  { %1170 = vmatpush.bf16.msrb.mxu2 %v2162_v15  ;;  %v2150_v0 = vor.u32 %v2545_v61, %v2147_v63  ;;  %v2540_v15 = vld [vmem:[#allocation4 + $0x24] sm:$0xf0]  ;;  %v2535_v28 = vld [vmem:[#allocation4 + $0x4] sm:$0xf]  ;;  %v2209_v61 = vld [vmem:[#allocation4 + $0xd0] sm:$0xf] }
  0x73   :  { %936 = vmatpush.bf16.msra.mxu3 %v1918_v18  ;;  %v2122_v17 = vor.u32 %v2540_v15, %v2121_v14  ;;  %v2123_v18 = vld [vmem:[#allocation4 + $0x28] sm:$0xf0]  ;;  %v2110_v34 = vor.u32 %v2535_v28, %v2107_v31  ;;  %v2561_v63 = vld [vmem:[#allocation4 + $0xd4] sm:$0xf]  ;;  %v2193_v15 = vld [vmem:[#allocation4 + $0xb0] sm:$0xf] }
  0x74   :  { %943 = vmatpush.bf16.msrb.mxu0 %v2030_v7  ;;  %v2129_v7 = vld [vmem:[#allocation4 + $0x30] sm:$0xf]  ;;  %v2203_v14 = vld [vmem:[#allocation4 + $0xc8] sm:$0xf0]  ;;  %v2553_v31 = vld [vmem:[#allocation4 + $0x94] sm:$0xf] }
  0x75   :  { %956 = vmatpush.bf16.msrb.mxu1 %v2094_v11  ;;  %v2130_v10 = vor.u32 %v2542_v8, %v2129_v7  ;;  %v2131_v11 = vld [vmem:[#allocation4 + $0x38] sm:$0xf0] }
  0x76   :  { %937 = vmatmul.bf16.vlgmr.msra.gmra.mxu3 %v2789_v27  ;;  %v1990_v27 = vor.u32 %v2505_v38, %v1987_v39  ;;  %1171 = vmatpush.bf16.msrb.mxu2 %v2154_v56  ;;  %v2134_v12 = vor.u32 %v2541_v9, %v2131_v11  ;;  %v2563_v56 = vld [vmem:[#allocation4 + $0xe4] sm:$0xf]  ;;  %v2201_v9 = vld [vmem:[#allocation4 + $0xc0] sm:$0xf] }
  0x77   :  { %v2222_v60 = vor.u32 %v2563_v56, %v2219_v57  ;;  %v2559_v11 = vld [vmem:[#allocation4 + $0xc4] sm:$0xf] }
  0x78   :  { %944 = vmatpush.bf16.msrb.mxu0 %v2022_v19  ;;  %v2126_v19 = vor.u32 %v2539_v16, %v2123_v18  ;;  %v2558_v16 = vld [vmem:[#allocation4 + $0xb4] sm:$0xf0]  ;;  %v2206_v18 = vor.u32 %v2559_v11, %v2203_v14  ;;  %v2581_v14 = vld [vmem:[#allocation6 + $0x74] sm:$0xf] }
  0x79   :  { %957 = vmatpush.bf16.msrb.mxu1 %v2086_v20  ;;  %v2113_v20 = vld [vmem:[#allocation4 + $0x10] sm:$0xf] }
  0x7a   :  { %1172 = vmatpush.bf16.msrb.mxu2 %v2146_v62  ;;  %v2114_v23 = vor.u32 %v2538_v21, %v2113_v20  ;;  %v2562_v62 = vld [vmem:[#allocation4 + $0xd4] sm:$0xf0]  ;;  %v2195_v20 = vld [vmem:[#allocation4 + $0xb8] sm:$0xf0] }
  0x7c   :  { %945 = vmatpush.bf16.msrb.mxu0 %v2014_v2 }
  0x7d   :  { %958 = vmatpush.bf16.msrb.mxu1 %v2078_v1  ;;  %v2118_v1 = vor.u32 %v2537_v22, %v2115_v24  ;;  %v2194_v22 = vor.u32 %v2558_v16, %v2193_v15  ;;  %v2185_v24 = vld [vmem:[#allocation4 + $0xa0] sm:$0xf]  ;;  %v2291_v15 = vld [vmem:[#allocation6 + $0x78] sm:$0xf0] }
  0x80   :  { %946 = vmatpush.bf16.msrb.mxu0 %v2006_v13 }
  0x81   :  { %959 = vmatpush.bf16.msrb.mxu1 %v2070_v30  ;;  %v2106_v30 = vor.u32 %v2536_v54, %v2105_v26  ;;  %v2187_v26 = vld [vmem:[#allocation4 + $0xa8] sm:$0xf0] }
  0x84   :  { %947 = vmatpush.bf16.msrb.mxu0 %v1998_v36 }
  0x85   :  { %960 = vmatpush.bf16.msrb.mxu1 %v2062_v37 }
  0x88   :  { %948 = vmatpush.bf16.msrb.mxu0 %v1990_v27 }
  0x89   :  { %961 = vmatpush.bf16.msrb.mxu1 %v2054_v42 }
  0x8c   :  { %949 = vmatpush.bf16.msrb.mxu0 %v1982_v49 }
  0x8d   :  { %962 = vmatpush.bf16.msrb.mxu1 %v2046_v50  ;;  %v2226_v50 = vor.u32 %v2566_v47, %v2225_v46 }
  0x8f   :  { %950 = vmatmul.bf16.vlgmr.msrb.gmra.mxu0 %v2791_v29  ;;  %v2543_v29 = vld [vmem:[#allocation4 + $0x44] sm:$0xf]  ;;  %1183 = vmatpush.bf16.msrb.mxu3 %v2226_v50 }
  0x90   :  { %1196 = vmatpush.bf16.msra.mxu0 %v2166_v51  ;;  %963 = vmatmul.bf16.vlgmr.msrb.gmra.mxu1 %v2793_v32  ;;  %v2138_v32 = vor.u32 %v2544_v4, %v2137_v3  ;;  %v2142_v6 = vor.u32 %v2543_v29, %v2139_v5  ;;  %v2227_v51 = vld [vmem:[#allocation4 + $0xf8] sm:$0xf0]  ;;  %v2210_v3 = vor.u32 %v2562_v62, %v2209_v61 }
  0x91   :  { %v2230_v55 = vor.u32 %v2565_v48, %v2227_v51  ;;  %v2211_v4 = vld [vmem:[#allocation4 + $0xd8] sm:$0xf0] }
  0x92   :  { %1173 = vmatpush.bf16.msrb.mxu2 %v2138_v32 }
  0x93   :  { %1209 = vmatpush.bf16.msra.mxu1 %v2230_v55 }
  0x94   :  { %1197 = vmatpush.bf16.msra.mxu0 %v2158_v58  ;;  %v2218_v58 = vor.u32 %v2564_v53, %v2217_v52 }
  0x96   :  { %1174 = vmatpush.bf16.msrb.mxu2 %v2130_v10  ;;  %1184 = vmatpush.bf16.msrb.mxu3 %v2218_v58  ;;  %v2560_v10 = vld [vmem:[#allocation4 + $0xc4] sm:$0xf0] }
  0x97   :  { %1210 = vmatpush.bf16.msra.mxu1 %v2222_v60 }
  0x98   :  { %1198 = vmatpush.bf16.msra.mxu0 %v2150_v0 }
  0x9a   :  { %1175 = vmatpush.bf16.msrb.mxu2 %v2122_v17  ;;  %1185 = vmatpush.bf16.msrb.mxu3 %v2210_v3  ;;  %v2598_v3 = vld [vmem:[#allocation6 + $0xf4] sm:$0xf0] }
  0x9c   :  { %1199 = vmatpush.bf16.msra.mxu0 %v2142_v6  ;;  %v2214_v6 = vor.u32 %v2561_v63, %v2211_v4  ;;  %v2597_v4 = vld [vmem:[#allocation6 + $0xf4] sm:$0xf] }
  0x9e   :  { %1176 = vmatpush.bf16.msrb.mxu2 %v2114_v23  ;;  %1211 = vmatpush.bf16.msra.mxu1 %v2214_v6  ;;  %v2596_v6 = vld [vmem:[#allocation6 + $0xe4] sm:$0xf0] }
  0xa0   :  { %1200 = vmatpush.bf16.msra.mxu0 %v2134_v12  ;;  %v2202_v12 = vor.u32 %v2560_v10, %v2201_v9  ;;  %v2347_v9 = vld [vmem:[#allocation6 + $0xe8] sm:$0xf0]  ;;  %v2289_v10 = vld [vmem:[#allocation6 + $0x70] sm:$0xf] }
  0xa2   :  { %1177 = vmatpush.bf16.msrb.mxu2 %v2106_v30  ;;  %1186 = vmatpush.bf16.msrb.mxu3 %v2202_v12  ;;  %v2554_v30 = vld [vmem:[#allocation4 + $0x94] sm:$0xf0] }
  0xa3   :  { %1212 = vmatpush.bf16.msra.mxu1 %v2206_v18  ;;  %v2582_v12 = vld [vmem:[#allocation6 + $0x74] sm:$0xf0]  ;;  %v2294_v18 = vor.u32 %v2581_v14, %v2291_v15  ;;  %v2572_v14 = vld [vmem:[#allocation6 + $0x24] sm:$0xf0]  ;;  %v2571_v15 = vld [vmem:[#allocation6 + $0x24] sm:$0xf] }
  0xa4   :  { %1201 = vmatpush.bf16.msra.mxu0 %v2126_v19  ;;  %v2557_v19 = vld [vmem:[#allocation4 + $0xb4] sm:$0xf] }
  0xa5   :  { %v2198_v23 = vor.u32 %v2557_v19, %v2195_v20  ;;  %v2337_v19 = vld [vmem:[#allocation6 + $0xd0] sm:$0xf]  ;;  %v2594_v20 = vld [vmem:[#allocation6 + $0xd4] sm:$0xf0] }
  0xa6   :  { %1187 = vmatpush.bf16.msrb.mxu3 %v2194_v22  ;;  %v2339_v22 = vld [vmem:[#allocation6 + $0xd8] sm:$0xf0] }
  0xa7   :  { %1213 = vmatpush.bf16.msra.mxu1 %v2198_v23  ;;  %v2281_v23 = vld [vmem:[#allocation6 + $0x60] sm:$0xf] }
  0xa8   :  { %1202 = vmatpush.bf16.msra.mxu0 %v2118_v1  ;;  %v2555_v1 = vld [vmem:[#allocation4 + $0xa4] sm:$0xf] }
  0xa9   :  { %v2190_v54 = vor.u32 %v2555_v1, %v2187_v26  ;;  %v2579_v1 = vld [vmem:[#allocation6 + $0x64] sm:$0xf]  ;;  %v2338_v26 = vor.u32 %v2594_v20, %v2337_v19  ;;  %v2297_v19 = vld [vmem:[#allocation6 + $0x80] sm:$0xf]  ;;  %v2584_v20 = vld [vmem:[#allocation6 + $0x84] sm:$0xf0] }
  0xab   :  { %1214 = vmatpush.bf16.msra.mxu1 %v2190_v54 }
  0xac   :  { %v795_v2 = vpop.f32.mrf.mxu0  ;;  %1203 = vmatpush.bf16.msra.mxu0 %v2110_v34 }
  0xad   :  { %v808_v25 = vpop.f32.mrf.mxu1  ;;  %v796_v39 = vadd.f32 %v795_v2, %v197_v35  ;;  %v2556_v2 = vld [vmem:[#allocation4 + $0xa4] sm:$0xf0]  ;;  %v2179_v35 = vld [vmem:[#allocation4 + $0x98] sm:$0xf0] }
  0xaf   :  { %v809_v41 = vadd.f32 %v808_v25, %v796_v39  ;;  %v2186_v25 = vor.u32 %v2556_v2, %v2185_v24  ;;  %v2169_v39 = vld [vmem:[#allocation4 + $0x80] sm:$0xf]  ;;  %v2580_v24 = vld [vmem:[#allocation6 + $0x64] sm:$0xf0] }
  0xb0   :  { %1450 = vmatpush.bf16.msrb.mxu0 %v2294_v18  ;;  %v2282_v2 = vor.u32 %v2580_v24, %v2281_v23  ;;  %v2299_v23 = vld [vmem:[#allocation6 + $0x88] sm:$0xf0] }
  0xb1   :  { %1188 = vmatpush.bf16.msrb.mxu3 %v2186_v25  ;;  %v2283_v25 = vld [vmem:[#allocation6 + $0x68] sm:$0xf0] }
  0xb2   :  { %v2286_v54 = vor.u32 %v2579_v1, %v2283_v25  ;;  %v2570_v1 = vld [vmem:[#allocation6 + $0x14] sm:$0xf0]  ;;  %v2569_v25 = vld [vmem:[#allocation6 + $0x14] sm:$0xf] }
  0xb4   :  { %v821_v13 = vpop.f32.mrf.mxu2  ;;  %v797_v36 = vpop.f32.mrf.mxu0  ;;  %1451 = vmatpush.bf16.msrb.mxu0 %v2286_v54  ;;  %v2243_v54 = vld [vmem:[#allocation6 + $0x18] sm:$0xf0] }
  0xb5   :  { %v810_v37 = vpop.f32.mrf.mxu1  ;;  %v822_v42 = vadd.f32 %v821_v13, %v809_v41  ;;  %v2177_v13 = vld [vmem:[#allocation4 + $0x90] sm:$0xf]  ;;  %v2182_v36 = vor.u32 %v2553_v31, %v2179_v35  ;;  %v2551_v41 = vld [vmem:[#allocation4 + $0x84] sm:$0xf]  ;;  %v2577_v35 = vld [vmem:[#allocation6 + $0x54] sm:$0xf] }
  0xb6   :  { %v2178_v34 = vor.u32 %v2554_v30, %v2177_v13  ;;  %v2592_v13 = vld [vmem:[#allocation6 + $0xc4] sm:$0xf0]  ;;  %v2273_v31 = vld [vmem:[#allocation6 + $0x50] sm:$0xf] }
  0xb7   :  { %1215 = vmatpush.bf16.msra.mxu1 %v2182_v36  ;;  %v2591_v36 = vld [vmem:[#allocation6 + $0xc4] sm:$0xf] }
  0xb8   :  { %1189 = vmatpush.bf16.msrb.mxu3 %v2178_v34  ;;  %v2578_v34 = vld [vmem:[#allocation6 + $0x54] sm:$0xf0] }
  0xb9   :  { %v834_v38 = vpop.f32.mrf.mxu3 }
  0xba   :  { %v835_v43 = vadd.f32 %v834_v38, %v822_v42  ;;  %v2171_v42 = vld [vmem:[#allocation4 + $0x88] sm:$0xf0] }
  0xbc   :  { %v823_v40 = vpop.f32.mrf.mxu2 }
  0xbd   :  { %v2552_v40 = vld [vmem:[#allocation4 + $0x84] sm:$0xf0] }
  0xc1   :  { %v836_v27 = vpop.f32.mrf.mxu3 }
  0xc2   :  { %v2170_v27 = vor.u32 %v2552_v40, %v2169_v39  ;;  %v2274_v39 = vor.u32 %v2578_v34, %v2273_v31  ;;  %v2567_v31 = vld [vmem:[#allocation6 + $0x4] sm:$0xf] }
  0xc4   :  { %1190 = vmatpush.bf16.msrb.mxu3 %v2170_v27 }
  0xcc   :  { %v847_v44 = vpop.f32.mrf.mxu0 }
  0xcd   :  { %v860_v45 = vpop.f32.mrf.mxu1  ;;  %v848_v49 = vadd.f32 %v847_v44, %v835_v43  ;;  %v2174_v43 = vor.u32 %v2551_v41, %v2171_v42  ;;  %v198_v44 = vperm.slane %v2808_v33, 1  ;;  %v2353_v33 = vld [vmem:[#allocation6 + $0xf0] sm:$0xf]  ;;  %v2265_v41 = vld [vmem:[#allocation6 + $0x40] sm:$0xf] }
  0xce   :  { %v2576_v42 = vld [vmem:[#allocation6 + $0x44] sm:$0xf0] }
  0xcf   :  { %v861_v59 = vadd.f32 %v860_v45, %v848_v49  ;;  %1216 = vmatpush.bf16.msra.mxu1 %v2174_v43  ;;  %v2575_v43 = vld [vmem:[#allocation6 + $0x44] sm:$0xf] }
  0xd4   :  { %v873_v0 = vpop.f32.mrf.mxu2  ;;  %v849_v32 = vpop.f32.mrf.mxu0 }
  0xd5   :  { %v874_v29 = vadd.f32 %v873_v0, %v861_v59  ;;  %v862_v5 = vpop.f32.mrf.mxu1  ;;  %v2355_v32 = vld [vmem:[#allocation6 + $0xf8] sm:$0xf0] }
  0xd6   :  { %v2345_v5 = vld [vmem:[#allocation6 + $0xe0] sm:$0xf] }
  0xd7   :  { %v968_v7 = vmax.f32 %v874_v29, 0.0  ;;  %v2354_v29 = vor.u32 %v2598_v3, %v2353_v33  ;;  %v2346_v11 = vor.u32 %v2596_v6, %v2345_v5  ;;  %v2305_v6 = vld [vmem:[#allocation6 + $0x90] sm:$0xf] }
  0xd9   :  { %v970_v8 = vpack.c.bf16 %v968_v7, %v968_v7  ;;  %v886_v17 = vpop.f32.mrf.mxu3  ;;  %v2358_v7 = vor.u32 %v2597_v4, %v2355_v32  ;;  %1437 = vmatpush.bf16.msra.mxu3 %v2354_v29 }
  0xda   :  { %v887_v48 = vadd.f32 %v886_v17, %v198_v44  ;;  %v2290_v17 = vor.u32 %v2582_v12, %v2289_v10  ;;  %v2267_v44 = vld [vmem:[#allocation6 + $0x48] sm:$0xf0]  ;;  %v2307_v10 = vld [vmem:[#allocation6 + $0x98] sm:$0xf0]  ;;  %v2249_v12 = vld [vmem:[#allocation6 + $0x20] sm:$0xf] }
  0xdb   :  { %1178 = vmatmul.bf16.vlgmr.msrb.gmra.mxu2 %v970_v8  ;;  %1204 = vmatmul.bf16.vlgmr.msra.gmra.mxu0 %v970_v8  ;;  %v2595_v8 = vld [vmem:[#allocation6 + $0xe4] sm:$0xf] }
  0xdc   :  { %v875_v21 = vpop.f32.mrf.mxu2  ;;  %1463 = vmatpush.bf16.msrb.mxu1 %v2358_v7  ;;  %v2350_v16 = vor.u32 %v2595_v8, %v2347_v9  ;;  %1424 = vmatpush.bf16.msra.mxu2 %v2290_v17  ;;  %v2586_v7 = vld [vmem:[#allocation6 + $0x94] sm:$0xf0]  ;;  %v2585_v8 = vld [vmem:[#allocation6 + $0x94] sm:$0xf]  ;;  %v2251_v17 = vld [vmem:[#allocation6 + $0x28] sm:$0xf0] }
  0xdd   :  { %v2593_v21 = vld [vmem:[#allocation6 + $0xd4] sm:$0xf]  ;;  %1438 = vmatpush.bf16.msra.mxu3 %v2346_v11  ;;  %v2306_v9 = vor.u32 %v2586_v7, %v2305_v6  ;;  %v2310_v11 = vor.u32 %v2585_v8, %v2307_v10  ;;  %v2254_v18 = vor.u32 %v2571_v15, %v2251_v17 }
  0xde   :  { %v2342_v30 = vor.u32 %v2593_v21, %v2339_v22  ;;  %v2583_v21 = vld [vmem:[#allocation6 + $0x84] sm:$0xf]  ;;  %v2298_v22 = vor.u32 %v2584_v20, %v2297_v19 }
  0xdf   :  { %v2302_v24 = vor.u32 %v2583_v21, %v2299_v23 }
  0xe0   :  { %1464 = vmatpush.bf16.msrb.mxu1 %v2350_v16  ;;  %1425 = vmatpush.bf16.msra.mxu2 %v2282_v2  ;;  %v2250_v16 = vor.u32 %v2572_v14, %v2249_v12  ;;  %v2241_v2 = vld [vmem:[#allocation6 + $0x10] sm:$0xf] }
  0xe1   :  { %v888_v28 = vpop.f32.mrf.mxu3  ;;  %1439 = vmatpush.bf16.msra.mxu3 %v2338_v26  ;;  %v2242_v26 = vor.u32 %v2570_v1, %v2241_v2 }
  0xe2   :  { %v2329_v28 = vld [vmem:[#allocation6 + $0xc0] sm:$0xf] }
  0xe3   :  { %v2330_v27 = vor.u32 %v2592_v13, %v2329_v28  ;;  %v2246_v28 = vor.u32 %v2569_v25, %v2243_v54  ;;  %v2233_v13 = vld [vmem:[#allocation6] sm:$0xf] }
  0xe4   :  { %1465 = vmatpush.bf16.msrb.mxu1 %v2342_v30  ;;  %1426 = vmatpush.bf16.msra.mxu2 %v2274_v39  ;;  %v2568_v30 = vld [vmem:[#allocation6 + $0x4] sm:$0xf0]  ;;  %v2613_v39 = vld [vmem:[%s2885_s7 + $0x70] sm:$0xff] }
  0xe5   :  { %1440 = vmatpush.bf16.msra.mxu3 %v2330_v27  ;;  %v2234_v34 = vor.u32 %v2568_v30, %v2233_v13  ;;  %v2604_v27 = vld [vmem:[%s2885_s7 + $0x28] sm:$0xff] }
  0xec   :  { %v899_v37 = vpop.f32.mrf.mxu0 }
  0xed   :  { %v912_v38 = vpop.f32.mrf.mxu1  ;;  %v900_v50 = vadd.f32 %v899_v37, %v887_v48  ;;  %v2331_v37 = vld [vmem:[#allocation6 + $0xc8] sm:$0xf0]  ;;  %v2589_v48 = vld [vmem:[#allocation6 + $0xb4] sm:$0xf] }
  0xef   :  { %v913_v52 = vadd.f32 %v912_v38, %v900_v50  ;;  %v2275_v38 = vld [vmem:[#allocation6 + $0x58] sm:$0xf0]  ;;  %v2266_v50 = vor.u32 %v2576_v42, %v2265_v41  ;;  %v2612_v41 = vld [vmem:[%s2885_s7 + $0x68] sm:$0xff]  ;;  %v1004_v42 = vld [vmem:[%s2882_s4] sm:$0x3] }
  0xf0   :  { %v2278_v40 = vor.u32 %v2577_v35, %v2275_v38  ;;  %v2235_v35 = vld [vmem:[#allocation6 + $0x8] sm:$0xf0]  ;;  %v2606_v38 = vld [vmem:[%s2885_s7 + $0x38] sm:$0xff] }
  0xf1   :  { %1427 = vmatpush.bf16.msra.mxu2 %v2266_v50 }
  0xf2   :  { %1452 = vmatpush.bf16.msrb.mxu0 %v2278_v40  ;;  %v2605_v40 = vld [vmem:[%s2885_s7 + $0x30] sm:$0xff] }
  0xf4   :  { %v901_v45 = vpop.f32.mrf.mxu0  ;;  %v925_v46 = vpop.f32.mrf.mxu2 }
  0xf5   :  { %v914_v47 = vpop.f32.mrf.mxu1  ;;  %v926_v55 = vadd.f32 %v925_v46, %v913_v52  ;;  %v2334_v45 = vor.u32 %v2591_v36, %v2331_v37  ;;  %v2321_v46 = vld [vmem:[#allocation6 + $0xb0] sm:$0xf]  ;;  %v2238_v36 = vor.u32 %v2567_v31, %v2235_v35  ;;  %v2614_v37 = vld [vmem:[%s2885_s7 + $0x78] sm:$0xff] }
  0xf6   :  { %v2590_v47 = vld [vmem:[#allocation6 + $0xb4] sm:$0xf0]  ;;  %v2257_v52 = vld [vmem:[#allocation6 + $0x30] sm:$0xf] }
  0xf7   :  { %1466 = vmatpush.bf16.msrb.mxu1 %v2334_v45 }
  0xf9   :  { %v938_v49 = vpop.f32.mrf.mxu3 }
  0xfa   :  { %v939_v56 = vadd.f32 %v938_v49, %v926_v55  ;;  %v2323_v49 = vld [vmem:[#allocation6 + $0xb8] sm:$0xf0]  ;;  %v2574_v55 = vld [vmem:[#allocation6 + $0x34] sm:$0xf0] }
  0xfc   :  { %v927_v51 = vpop.f32.mrf.mxu2 }
  0xfd   :  { %v2270_v51 = vor.u32 %v2575_v43, %v2267_v44  ;;  %v2611_v43 = vld [vmem:[%s2885_s7 + $0x60] sm:$0xff]  ;;  %v1007_v44 = vperm.slane %v1004_v42, 1 }
  0xff   :  { %1453 = vmatpush.bf16.msrb.mxu0 %v2270_v51 }
 0x101   :  { %v940_v53 = vpop.f32.mrf.mxu3 }
 0x102   :  { %v2322_v53 = vor.u32 %v2590_v47, %v2321_v46  ;;  %v1006_v47 = vperm.slane %v1004_v42, 0 }
 0x104   :  { %1441 = vmatpush.bf16.msra.mxu3 %v2322_v53 }
 0x10c   :  { %v951_v57 = vpop.f32.mrf.mxu0 }
 0x10d   :  { %v952_v58 = vadd.f32 %v951_v57, %v939_v56  ;;  %v964_v59 = vpop.f32.mrf.mxu1  ;;  %v2573_v56 = vld [vmem:[#allocation6 + $0x34] sm:$0xf]  ;;  %v2259_v57 = vld [vmem:[#allocation6 + $0x38] sm:$0xf0] }
 0x10e   :  { %v2262_v33 = vor.u32 %v2573_v56, %v2259_v57 }
 0x10f   :  { %v965_v60 = vadd.f32 %v964_v59, %v952_v58  ;;  %v2326_v58 = vor.u32 %v2589_v48, %v2323_v49  ;;  %v2313_v59 = vld [vmem:[#allocation6 + $0xa0] sm:$0xf] }
 0x110   :  { %1454 = vmatpush.bf16.msrb.mxu0 %v2262_v33  ;;  %v2607_v33 = vld [vmem:[%s2885_s7 + $0x40] sm:$0xff] }
 0x111   :  { %v969_v61 = vmax.f32 %v965_v60, 0.0  ;;  %v2588_v60 = vld [vmem:[#allocation6 + $0xa4] sm:$0xf0]  ;;  %1467 = vmatpush.bf16.msrb.mxu1 %v2326_v58 }
 0x112   :  { %v2314_v3 = vor.u32 %v2588_v60, %v2313_v59  ;;  %v2610_v59 = vld [vmem:[%s2885_s7 + $0x58] sm:$0xff]  ;;  %v2603_v60 = vld [vmem:[%s2885_s7 + $0x20] sm:$0xff] }
 0x113   :  { %v971_v62 = vpack.c.bf16 %v969_v61, %v969_v61  ;;  %v2587_v61 = vld [vmem:[#allocation6 + $0xa4] sm:$0xf] }
 0x114   :  { %v953_v63 = vpop.f32.mrf.mxu0  ;;  %1442 = vmatpush.bf16.msra.mxu3 %v2314_v3  ;;  %1455 = vmatpush.bf16.msrb.mxu0 %v2254_v18  ;;  %v2600_v3 = vld [vmem:[%s2885_s7 + $0x8] sm:$0xff] }
 0x115   :  { %v966_v0 = vpop.f32.mrf.mxu1  ;;  %1191 = vmatmul.bf16.vlgmr.msrb.gmra.mxu3 %v971_v62  ;;  %1217 = vmatmul.bf16.vlgmr.msra.gmra.mxu1 %v971_v62  ;;  %v2315_v62 = vld [vmem:[#allocation6 + $0xa8] sm:$0xf0] }
 0x116   :  { %v2258_v0 = vor.u32 %v2574_v55, %v2257_v52  ;;  %v2318_v4 = vor.u32 %v2587_v61, %v2315_v62  ;;  %v2609_v61 = vld [vmem:[%s2885_s7 + $0x50] sm:$0xff]  ;;  %v2602_v62 = vld [vmem:[%s2885_s7 + $0x18] sm:$0xff] }
 0x118   :  { %1428 = vmatpush.bf16.msra.mxu2 %v2258_v0  ;;  %1468 = vmatpush.bf16.msrb.mxu1 %v2318_v4  ;;  %v2601_v0 = vld [vmem:[%s2885_s7 + $0x10] sm:$0xff]  ;;  %v2599_v4 = vld [vmem:[%s2885_s7] sm:$0xff] }
 0x119   :  { %1443 = vmatpush.bf16.msra.mxu3 %v2306_v9  ;;  %1456 = vmatpush.bf16.msrb.mxu0 %v2246_v28 }
 0x11c   :  { %1469 = vmatpush.bf16.msrb.mxu1 %v2310_v11  ;;  %1429 = vmatpush.bf16.msra.mxu2 %v2250_v16 }
 0x11d   :  { %1444 = vmatpush.bf16.msra.mxu3 %v2298_v22  ;;  %1457 = vmatpush.bf16.msrb.mxu0 %v2238_v36 }
 0x120   :  { %1470 = vmatpush.bf16.msrb.mxu1 %v2302_v24  ;;  %1430 = vmatpush.bf16.msra.mxu2 %v2242_v26  ;;  %v2620_v24 = vld [vmem:[%s2886_s8] ss:$0 sm:$0xff] }
 0x121   :  { %1625 = vmatpush.bf16.msrb.mxu3 %v2614_v37 }
 0x124   :  { %1431 = vmatpush.bf16.msra.mxu2 %v2234_v34 }
 0x125   :  { %1626 = vmatpush.bf16.msrb.mxu3 %v2613_v39 }
 0x128   :  { %1612 = vmatpush.bf16.msrb.mxu2 %v2606_v38 }
 0x129   :  { %1627 = vmatpush.bf16.msrb.mxu3 %v2612_v41 }
 0x12c   :  { %1613 = vmatpush.bf16.msrb.mxu2 %v2605_v40 }
 0x12d   :  { %1628 = vmatpush.bf16.msrb.mxu3 %v2611_v43 }
 0x130   :  { %1614 = vmatpush.bf16.msrb.mxu2 %v2604_v27 }
 0x131   :  { %1629 = vmatpush.bf16.msrb.mxu3 %v2610_v59 }
 0x134   :  { %1615 = vmatpush.bf16.msrb.mxu2 %v2603_v60 }
 0x135   :  { %1630 = vmatpush.bf16.msrb.mxu3 %v2609_v61 }
 0x138   :  { %1616 = vmatpush.bf16.msrb.mxu2 %v2602_v62 }
 0x13c   :  { %1617 = vmatpush.bf16.msrb.mxu2 %v2601_v0 }
 0x140   :  { %1618 = vmatpush.bf16.msrb.mxu2 %v2600_v3 }
 0x144   :  { %1619 = vmatpush.bf16.msrb.mxu2 %v2599_v4 }
 0x158   :  { %v2812_v63 = vpop.f32.mrf.mxu0 }
 0x159   :  { %v1206_v45 = vadd.f32 %v2812_v63, %v1007_v44  ;;  %v2608_v63 = vld [vmem:[%s2885_s7 + $0x48] sm:$0xff] }
 0x15a   :  { %1631 = vmatpush.bf16.msrb.mxu3 %v2608_v63 }
 0x15e   :  { %v2814_v29 = vpop.f32.mrf.mxu2  ;;  %1632 = vmatpush.bf16.msrb.mxu3 %v2607_v33 }
 0x15f   :  { %v1180_v50 = vadd.f32 %v2814_v29, %v1006_v47 }
 0x160   :  { %v1207_v32 = vpop.f32.mrf.mxu0 }
 0x161   :  { %v1258_v32 = vld [vmem:[%s2884_s6] sm:$0x3] }
 0x162   :  { %v1260_v11 = vperm.slane %v1258_v32, 0 }
 0x166   :  { %v1181_v5 = vpop.f32.mrf.mxu2 }
 0x167   :  { %v1261_v5 = vperm.slane %v1258_v32, 1 }
 0x192   :  { %v1218_v46 = vpop.f32.mrf.mxu1 }
 0x193   :  { %v1219_v48 = vadd.f32 %v1218_v46, %v1206_v45 }
 0x195   :  { %v1223_v49 = vmax.f32 %v1219_v48, 0.0 }
 0x197   :  { %v1225_v51 = vpack.c.bf16 %v1223_v49, %v1223_v49 }
 0x198   :  { %v1192_v52 = vpop.f32.mrf.mxu3 }
 0x199   :  { %v1193_v53 = vadd.f32 %v1192_v52, %v1180_v50  ;;  %1445 = vmatmul.bf16.vlgmr.msra.gmra.mxu3 %v1225_v51  ;;  %1471 = vmatmul.bf16.vlgmr.msrb.gmra.mxu1 %v1225_v51 }
 0x19a   :  { %v1220_v55 = vpop.f32.mrf.mxu1 }
 0x19b   :  { %v1222_v56 = vmax.f32 %v1193_v53, 0.0 }
 0x19d   :  { %v1224_v57 = vpack.c.bf16 %v1222_v56, %v1222_v56 }
 0x19f   :  { %1432 = vmatmul.bf16.vlgmr.msra.gmra.mxu2 %v1224_v57  ;;  %1458 = vmatmul.bf16.vlgmr.msrb.gmra.mxu0 %v1224_v57 }
 0x1a0   :  { %v1194_v58 = vpop.f32.mrf.mxu3 }
 0x216   :  { %v1472_v29 = vpop.f32.mrf.mxu1 }
 0x21c   :  { %v1446_v6 = vpop.f32.mrf.mxu3  ;;  %v1459_v7 = vpop.f32.mrf.mxu0 }
 0x21d   :  { %v1460_v8 = vadd.f32 %v1459_v7, %v1261_v5 }
 0x21e   :  { %v1474_v9 = vpop.f32.mrf.mxu1 }
 0x21f   :  { %v1473_v10 = vadd.f32 %v1472_v29, %v1460_v8 }
 0x221   :  { %v1477_v12 = vmax.f32 %v1473_v10, 0.0 }
 0x222   :  { %v1433_v14 = vpop.f32.mrf.mxu2 }
 0x223   :  { %v1479_v15 = vpack.c.bf16 %v1477_v12, %v1477_v12  ;;  %v1434_v16 = vadd.f32 %v1433_v14, %v1260_v11 }
 0x224   :  { %v1448_v17 = vpop.f32.mrf.mxu3  ;;  %v1461_v18 = vpop.f32.mrf.mxu0 }
 0x225   :  { %v1447_v19 = vadd.f32 %v1446_v6, %v1434_v16  ;;  %1633 = vmatmul.bf16.vlgmr.msrb.gmra.mxu3 %v1479_v15 }
 0x227   :  { %v1476_v20 = vmax.f32 %v1447_v19, 0.0 }
 0x229   :  { %v1478_v21 = vpack.c.bf16 %v1476_v20, %v1476_v20 }
 0x22a   :  { %v1435_v22 = vpop.f32.mrf.mxu2 }
 0x22b   :  { %1620 = vmatmul.bf16.vlgmr.msrb.gmra.mxu2 %v1478_v21 }
 0x2a8   :  { %v1634_v23 = vpop.f32.mrf.mxu3 }
 0x2ae   :  { %v1621_v2 = vpop.f32.mrf.mxu2 }
 0x2af   :  { %v1622_v1 = vadd.f32 %v2620_v24, %v1621_v2 }
 0x2b0   :  { %v1636_v25 = vpop.f32.mrf.mxu3 }
 0x2b1   :  { %v1635_v26 = vadd.f32 %v1634_v23, %v1622_v1 }
 0x2b3   :  { %1638 = vmax.xlane.f32.xlu0 %v1635_v26 }
 0x2b6   :  { %v1623_v54 = vpop.f32.mrf.mxu2 }
 0x326   :  { %v1639_v28 = vpop.xlane.xlu0 %1638 }
 0x327   :  { %v1640_v13 = vsub.f32 %v1635_v26, %v1639_v28 }
 0x329   :  { %v1641_v30 = vmul.f32 1.442695, %v1640_v13 }
 0x32b   :  { %2621 = vpow2.f32 %v1641_v30 }
 0x331   :  { %v2622_v31 = vpop.eup %2621 }
 0x332   :  { %1643 = vadd.xlane.f32.xlu0 %v2622_v31 }
 0x3a5   :  { %v1644_v34 = vpop.xlane.xlu0 %1643 }
 0x3a6   :  { %2623 = vlog2.f32 %v1644_v34 }
 0x3ac   :  { %v2624_v35 = vpop.eup %2623 }
 0x3ad   :  { %v1646_v36 = vmul.f32 0.6931472, %v2624_v35 }
 0x3af   :  { %v1647_v37 = vsub.f32 %v1640_v13, %v1646_v36 }
 0x3b1   :  { %1648 = vst [vmem:[%s2887_s9] sm:$0xff] %v1647_v37 }
 0x3b2   :  { %1653 = vsyncpa [#allocation3], 1 }
 0x3b3   :  { %1654 = vsyncpa [#allocation5], 1 }

</bundles_post_ra>
